<compile_context>
chip_gen: v7x
topology: tpu7x:2x2x1
jax: 0.10.0
libtpu: 0.0.40
codegen_flags: <defaults>
</compile_context>

<pallas_src>
import functools
import math

import jax
import jax.numpy as jnp
from jax import lax
from jax.experimental import pallas as pl
from jax.experimental.pallas import tpu as pltpu


def _round_up(n, m):
    return ((n + m - 1) // m) * m


# ----------------------------------------------------------------------------
# Fast reciprocal: EUP approx + one Newton-Raphson refinement (kernel only).
# ----------------------------------------------------------------------------
def _fast_recip(s):
    r = pl.reciprocal(s, approx=True)
    return r * (2.0 - s * r)


def _exact_recip(s):
    return 1.0 / s


# ----------------------------------------------------------------------------
# Per-batch-element math AFTER the fused 1x1-conv matmul.  Shared between the
# Pallas kernel and the pure-JAX reference (only `recip` differs).
#   x_i:     (C, HW)    residual input
#   fused_i: (K+3C, HW) relu(conv+bn) of the four branches, stacked
# Returns (C, HW).  K-sized intermediates stay in lane-dense (K, C) layout.
# ----------------------------------------------------------------------------
def _dgr_tail(x_i, fused_i, wg16, gbn_s, gbn_b, dbn_s_row, dbn_b_col, *, K, recip):
    f32 = jnp.float32
    bf16 = jnp.bfloat16
    C = x_i.shape[0]

    def softmax(a, axis):
        m = jnp.max(a, axis=axis, keepdims=True)
        e = jnp.exp(a - m)
        return e * recip(jnp.sum(e, axis=axis, keepdims=True))

    def l2_normalize(a, axis):
        # F.normalize(p=2): a / max(||a||, 1e-12)
        ss = jnp.maximum(jnp.sum(a * a, axis=axis, keepdims=True), 1e-24)
        return a * lax.rsqrt(ss)

    phi16 = fused_i[:K].astype(bf16)                     # (K, HW)
    theta = fused_i[K:K + C]                             # (C, HW)
    rou = fused_i[K + C:K + 2 * C]                       # (C, HW)
    val16 = fused_i[K + 2 * C:].astype(bf16)             # (C, HW)

    theta_sm16 = softmax(theta, -1).astype(bf16)         # softmax over HW
    rou_sm16 = softmax(rou, 0).astype(bf16)              # softmax over C

    # discrib = x_phi @ softmax(x_theta)^T : (K, C)
    discrib16 = jnp.einsum("kh,ch->kc", phi16, theta_sm16,
                           preferred_element_type=f32).astype(bf16)
    # Q kept in (K, HW) layout (== torch Q before the final permute).
    Qm = jnp.dot(discrib16, rou_sm16, preferred_element_type=f32)    # (K, HW)

    Qm = softmax(l2_normalize(Qm, -1), 0)                # F.normalize over HW, softmax over K
    qm16 = Qm.astype(bf16)                               # cast once, used twice

    # Z = (Q * value).sum(HW) / Q.sum(HW), laid out (K, C)
    q_inv = recip(jnp.sum(Qm, axis=-1, keepdims=True))   # (K, 1)
    Zt = jnp.einsum("kh,ch->kc", qm16, val16, preferred_element_type=f32) * q_inv
    Zt = l2_normalize(Zt, -1)                            # L2 over C per k
    zt16 = Zt.astype(bf16)                               # cast once, used thrice

    # GraphConvolution on Z^T = (K, C).  K=8 matmuls are latency- not
    # throughput-bound; kept on the MXU (batching across b_blk<=2 gains little).
    adj16 = softmax(jnp.einsum("kc,lc->kl", zt16, zt16,
                               preferred_element_type=f32), -1).astype(bf16)
    support16 = jnp.dot(zt16, wg16, preferred_element_type=f32).astype(bf16)
    gout = jnp.maximum(jnp.dot(adj16, support16, preferred_element_type=f32), 0.0)
    # BN1d(eval fold) with gamma already folded into gbn_s/gbn_b, + residual Z.
    graph = gout * gbn_s + gbn_b + Zt                    # (K, C)

    # Fold the DGR BN2d scale into the (K, C) graph before projecting back to
    # (C, HW): 8x32 multiply instead of 32xHW and no (C,1)->(C,HW) lane splat.
    graph16 = (graph * dbn_s_row).astype(bf16)
    out = jnp.einsum("kc,kh->ch", graph16, qm16, preferred_element_type=f32)
    return out + dbn_b_col + x_i                         # BN2d bias + residual


# ----------------------------------------------------------------------------
# Pallas kernel: one grid step = one block of b_blk batch elements.
# ----------------------------------------------------------------------------
def _dgr_kernel(x_ref, w_ref, wg_ref, gbn_s_ref, gbn_b_ref, dbn_s_ref, dbn_b_ref,
                o_ref, *, hw):
    bf16 = jnp.bfloat16
    C = wg_ref.shape[0]
    K = w_ref.shape[0] - 3 * C
    lanes = x_ref.shape[1]
    b_blk = lanes // hw

    # Shared operands: load + cast to bf16 ONCE (not per unrolled element).
    x_blk = x_ref[...]                                   # (Cpad, b_blk*HW), f32
    x16 = x_blk.astype(bf16)
    w16 = w_ref[...].astype(bf16)                        # (K+3C, Cpad); bias column folded in
    wg16 = wg_ref[...].astype(bf16)
    gbn_s = gbn_s_ref[...]
    gbn_b = gbn_b_ref[...]
    dbn_s = dbn_s_ref[...]
    dbn_b = dbn_b_ref[...]

    # ONE MXU pass for all four 1x1-conv+BN+ReLU branches across the whole
    # block (N = b_blk*HW lanes); conv bias rides in the ones-row / bias-column.
    fused = jnp.maximum(jnp.dot(w16, x16, preferred_element_type=jnp.float32), 0.0)

    # Bounded static unroll (b_blk <= 2); slices start at static multiples of
    # HW (multiples of 128 lanes), so loads/stores stay lane-dense.
    for i in range(b_blk):
        lo = i * hw
        o_ref[:, lo:lo + hw] = _dgr_tail(
            x_blk[:C, lo:lo + hw], fused[:, lo:lo + hw], wg16,
            gbn_s, gbn_b, dbn_s, dbn_b, K=K, recip=_fast_recip)


# ----------------------------------------------------------------------------
# Grid / batch-block selection (TensorCore-count aware).
# ----------------------------------------------------------------------------
def _num_tensorcores():
    """2 TensorCores per chip on v7x, 1 on v5e/v6e."""
    try:
        kind = jax.devices()[0].device_kind.lower()
    except Exception:
        return 1
    return 2 if ("v7" in kind or "7x" in kind) else 1


def _pick_b_blk(B):
    """Largest batch block <= 2 (bounded unroll, no vreg spills) that still
    leaves at least one grid step per TensorCore (1 on v5e/v6e, 2 on v7x)."""
    n_tc = _num_tensorcores()
    b_blk = 1
    if B % 2 == 0 and (B // 2) >= n_tc:
        b_blk = 2
    return b_blk


def dgr_forward(x_nchw, params, *, b_blk=None):
    w_aug = params[0]
    B, C, H, W = x_nchw.shape
    HW = H * W
    Cpad = w_aug.shape[1]                     # C + 1 (ones/bias row), padded to 8

    # Wrapper-side layout: (B, C, H, W) -> (Cpad, B*HW) with a ones row (for the
    # folded conv bias) and zero padding rows (contraction dim 8-aligned).
    x_cl = x_nchw.reshape(B, C, HW).transpose(1, 0, 2).reshape(C, B * HW)
    x_aug = jnp.concatenate(
        [x_cl,
         jnp.ones((1, B * HW), x_cl.dtype),
         jnp.zeros((Cpad - C - 1, B * HW), x_cl.dtype)], axis=0)

    if b_blk is None:
        b_blk = _pick_b_blk(B)
    assert B % b_blk == 0
    n_steps = B // b_blk
    lanes = b_blk * HW

    kernel = functools.partial(_dgr_kernel, hw=HW)
    x_spec = pl.BlockSpec((Cpad, lanes), lambda g: (0, g))
    param_specs = [pl.BlockSpec(p.shape, lambda g: (0, 0)) for p in params]

    # Per-step VMEM footprint (double-buffered in+out slabs + params) is far
    # below the 32 MiB default scoped limit on all generations at these sizes;
    # pass pltpu.CompilerParams(vmem_limit_bytes=...) if C/HW scale up (v7x has
    # only 64 MiB physical VMEM).
    out_flat = pl.pallas_call(
        kernel,
        out_shape=jax.ShapeDtypeStruct((C, B * HW), jnp.float32),
        grid=(n_steps,),
        in_specs=[x_spec] + param_specs,
        out_specs=pl.BlockSpec((C, lanes), lambda g: (0, g)),
        compiler_params=pltpu.CompilerParams(
            dimension_semantics=("parallel",)),
    )(x_aug, *params)

    return out_flat.reshape(C, B, HW).transpose(1, 0, 2).reshape(B, C, H, W)


def dgr_reference(x_nchw, params):
    """Pure-JAX reference with identical folded-BN / bf16-matmul math
    (exact reciprocals instead of the EUP approximation)."""
    w_aug, wg, gbn_s, gbn_b, dbn_s_row, dbn_b_col = params
    B, C, H, W = x_nchw.shape
    HW = H * W
    Cpad = w_aug.shape[1]
    K = w_aug.shape[0] - 3 * C
    bf16 = jnp.bfloat16
    w16 = w_aug.astype(bf16)
    wg16 = wg.astype(bf16)

    def one(xb):                                         # xb: (C, HW)
        x_aug = jnp.concatenate(
            [xb, jnp.ones((1, HW), xb.dtype),
             jnp.zeros((Cpad - C - 1, HW), xb.dtype)], axis=0)
        fused = jnp.maximum(
            jnp.dot(w16, x_aug.astype(bf16), preferred_element_type=jnp.float32), 0.0)
        return _dgr_tail(xb, fused, wg16, gbn_s, gbn_b, dbn_s_row, dbn_b_col,
                         K=K, recip=_exact_recip)

    x_flat = x_nchw.reshape(B, C, HW)
    return jax.vmap(one)(x_flat).reshape(B, C, H, W)


# ----------------------------------------------------------------------------
# Deterministic parameter construction (shapes follow the torch __init__),
# then trace-time fusion into kernel-ready tensors.
# ----------------------------------------------------------------------------
def make_params(key, C, K):
    ks = jax.random.split(key, 24)

    def conv_bn(kw, kg, kb, km, kv, cout):
        w = jax.random.normal(kw, (cout, C), jnp.float32) * (1.0 / math.sqrt(C))
        g = jax.random.uniform(kg, (cout,), jnp.float32, 0.5, 1.5)
        b = jax.random.normal(kb, (cout,), jnp.float32) * 0.1
        m = jax.random.normal(km, (cout,), jnp.float32) * 0.1
        v = jax.random.uniform(kv, (cout,), jnp.float32, 0.5, 1.5)
        s = g / jnp.sqrt(v + 1e-5)
        return w * s[:, None], (b - m * s)[:, None]

    wphi, bphi = conv_bn(*ks[0:5], K)      # phi:   C -> K
    wth, bth = conv_bn(*ks[5:10], C)       # theta: C -> C
    wrou, brou = conv_bn(*ks[10:15], C)    # rou:   C -> C
    wval, bval = conv_bn(*ks[15:20], C)    # value: C -> C

    stdv = 1.0 / math.sqrt(C)
    wg = jax.random.uniform(ks[20], (C, C), jnp.float32, -stdv, stdv)  # GCN weight

    # GCN BatchNorm1d(C): running stats (0,1), eps=1e-5; torch zero-inits the
    # affine params -> nonzero here so the branch is exercised.
    gbn_g = jax.random.uniform(ks[21], (C,), jnp.float32, 0.5, 1.5)
    gbn_beta = jax.random.normal(ks[22], (C,), jnp.float32) * 0.1
    gbn_s = gbn_g / jnp.sqrt(1.0 + 1e-5)
    gbn_b = gbn_beta

    # DGR BatchNorm2d(C, eps=1e-4): running stats (0,1); nonzero affine.
    dbn_g = jax.random.uniform(ks[23], (C,), jnp.float32, 0.5, 1.5)
    dbn_beta = jnp.full((C,), 0.05, jnp.float32)
    dbn_s = dbn_g / jnp.sqrt(1.0 + 1e-4)
    dbn_b = dbn_beta

    gamma = jnp.float32(0.5)  # torch inits to 0; nonzero to exercise the GCN path

    return (wphi, bphi, wth, bth, wrou, brou, wval, bval,
            wg, gbn_s, gbn_b, dbn_s, dbn_b, gamma)


def fuse_params(raw):
    """Trace-time fusion:
       * concat the four 1x1-conv branches; fold their bias into an extra
         matmul column (paired with a ones row in x), pad contraction dim to 8,
       * fold gamma into the GCN-BN scale/bias,
       * DGR-BN scale as a (1, C) row (applied to the (K, C) graph),
         DGR-BN bias as a (C, 1) column."""
    (wphi, bphi, wth, bth, wrou, brou, wval, bval,
     wg, gbn_s, gbn_b, dbn_s, dbn_b, gamma) = raw
    C = wg.shape[0]
    K = wphi.shape[0]

    w_all = jnp.concatenate([wphi, wth, wrou, wval], axis=0)   # (K+3C, C)
    b_all = jnp.concatenate([bphi, bth, brou, bval], axis=0)   # (K+3C, 1)
    Cpad = _round_up(C + 1, 8)
    w_aug = jnp.concatenate(
        [w_all, b_all, jnp.zeros((K + 3 * C, Cpad - C - 1), w_all.dtype)], axis=1)

    gbn_s_row = (gbn_s * gamma).reshape(1, C)
    gbn_b_row = (gbn_b * gamma).reshape(1, C)
    dbn_s_row = dbn_s.reshape(1, C)
    dbn_b_col = dbn_b.reshape(C, 1)

    return (w_aug, wg, gbn_s_row, gbn_b_row, dbn_s_row, dbn_b_col)


if __name__ == "__main__":
    B, C, K, H, W = 2, 32, 8, 16, 16   # HW = 256 -> lane-dense loads/stores

    key = jax.random.PRNGKey(0)
    kx, kp = jax.random.split(key)
    x = jax.random.normal(kx, (B, C, H, W), jnp.float32)
    params = fuse_params(make_params(kp, C, K))

    out = dgr_forward(x, params)
    out = jax.block_until_ready(out)

    ref = dgr_reference(x, params)
    assert out.shape == (B, C, H, W)
    assert bool(jnp.all(jnp.isfinite(out)))
    assert bool(jnp.allclose(out, ref, rtol=1e-3, atol=1e-3)), "kernel/reference mismatch"

    print("KERNEL_OK")
</pallas_src>

<mosaic_0001>
module attributes {stable_mosaic.version = 11 : i64} {
  func.func @_dgr_kernel(%arg0: i32, %arg1: memref<40x512xf32, #tpu.memory_space<vmem>>, %arg2: memref<104x40xf32, #tpu.memory_space<vmem>>, %arg3: memref<32x32xf32, #tpu.memory_space<vmem>>, %arg4: memref<1x32xf32, #tpu.memory_space<vmem>>, %arg5: memref<1x32xf32, #tpu.memory_space<vmem>>, %arg6: memref<1x32xf32, #tpu.memory_space<vmem>>, %arg7: memref<32x1xf32, #tpu.memory_space<vmem>>, %arg8: memref<32x512xf32, #tpu.memory_space<vmem>>) attributes {dimension_semantics = [#tpu.dimension_semantics<parallel>], iteration_bounds = array<i64: 1>, scalar_prefetch = 0 : i64, scratch_operands = 0 : i64, tpu.core_type = #tpu.core_type<tc>, window_params = [{transform_indices = @transform_0, window_bounds = array<i64: 40, 512>}, {pipeline_mode = #tpu.pipeline_mode<synchronous>, transform_indices = @transform_1, window_bounds = array<i64: 104, 40>}, {pipeline_mode = #tpu.pipeline_mode<synchronous>, transform_indices = @transform_2, window_bounds = array<i64: 32, 32>}, {pipeline_mode = #tpu.pipeline_mode<synchronous>, transform_indices = @transform_3, window_bounds = array<i64: 1, 32>}, {pipeline_mode = #tpu.pipeline_mode<synchronous>, transform_indices = @transform_4, window_bounds = array<i64: 1, 32>}, {pipeline_mode = #tpu.pipeline_mode<synchronous>, transform_indices = @transform_5, window_bounds = array<i64: 1, 32>}, {pipeline_mode = #tpu.pipeline_mode<synchronous>, transform_indices = @transform_6, window_bounds = array<i64: 32, 1>}, {transform_indices = @transform_7, window_bounds = array<i64: 32, 512>}]} {
    %c0 = arith.constant 0 : index
    %c0_0 = arith.constant 0 : index
    %0 = vector.load %arg1[%c0, %c0_0] : memref<40x512xf32, #tpu.memory_space<vmem>>, vector<40x512xf32>
    %1 = arith.truncf %0 : vector<40x512xf32> to vector<40x512xbf16>
    %c0_1 = arith.constant 0 : index
    %c0_2 = arith.constant 0 : index
    %2 = vector.load %arg2[%c0_1, %c0_2] : memref<104x40xf32, #tpu.memory_space<vmem>>, vector<104x40xf32>
    %3 = arith.truncf %2 : vector<104x40xf32> to vector<104x40xbf16>
    %c0_3 = arith.constant 0 : index
    %c0_4 = arith.constant 0 : index
    %4 = vector.load %arg3[%c0_3, %c0_4] : memref<32x32xf32, #tpu.memory_space<vmem>>, vector<32x32xf32>
    %5 = arith.truncf %4 : vector<32x32xf32> to vector<32x32xbf16>
    %c0_5 = arith.constant 0 : index
    %c0_6 = arith.constant 0 : index
    %6 = vector.load %arg4[%c0_5, %c0_6] : memref<1x32xf32, #tpu.memory_space<vmem>>, vector<1x32xf32>
    %c0_7 = arith.constant 0 : index
    %c0_8 = arith.constant 0 : index
    %7 = vector.load %arg5[%c0_7, %c0_8] : memref<1x32xf32, #tpu.memory_space<vmem>>, vector<1x32xf32>
    %c0_9 = arith.constant 0 : index
    %c0_10 = arith.constant 0 : index
    %8 = vector.load %arg6[%c0_9, %c0_10] : memref<1x32xf32, #tpu.memory_space<vmem>>, vector<1x32xf32>
    %c0_11 = arith.constant 0 : index
    %c0_12 = arith.constant 0 : index
    %9 = vector.load %arg7[%c0_11, %c0_12] : memref<32x1xf32, #tpu.memory_space<vmem>>, vector<32x1xf32>
    %cst = arith.constant dense<0.000000e+00> : vector<104x512xf32>
    %10 = tpu.matmul %3, %1, %cst {dimension_numbers = #tpu.dot_dimension_numbers<[1], [0], [0], [1], [0, 0, 1, 1], [], []>} : vector<104x40xbf16>, vector<40x512xbf16>, vector<104x512xf32> -> vector<104x512xf32>
    %cst_13 = arith.constant 0.000000e+00 : f32
    %11 = vector.broadcast %cst_13 : f32 to vector<104x512xf32>
    %12 = arith.maximumf %10, %11 : vector<104x512xf32>
    %13 = vector.extract_strided_slice %0 {offsets = [0, 0], sizes = [32, 256], strides = [1, 1]} : vector<40x512xf32> to vector<32x256xf32>
    %14 = vector.extract_strided_slice %12 {offsets = [0, 0], sizes = [104, 256], strides = [1, 1]} : vector<104x512xf32> to vector<104x256xf32>
    %15 = vector.extract_strided_slice %14 {offsets = [0, 0], sizes = [8, 256], strides = [1, 1]} : vector<104x256xf32> to vector<8x256xf32>
    %16 = arith.truncf %15 : vector<8x256xf32> to vector<8x256xbf16>
    %17 = vector.extract_strided_slice %14 {offsets = [8, 0], sizes = [32, 256], strides = [1, 1]} : vector<104x256xf32> to vector<32x256xf32>
    %18 = vector.extract_strided_slice %14 {offsets = [40, 0], sizes = [32, 256], strides = [1, 1]} : vector<104x256xf32> to vector<32x256xf32>
    %19 = vector.extract_strided_slice %14 {offsets = [72, 0], sizes = [32, 256], strides = [1, 1]} : vector<104x256xf32> to vector<32x256xf32>
    %20 = arith.truncf %19 : vector<32x256xf32> to vector<32x256xbf16>
    %cst_14 = arith.constant dense<0xFF800000> : vector<32xf32>
    %21 = vector.multi_reduction <maximumf>, %17, %cst_14 [1] : vector<32x256xf32> to vector<32xf32>
    %22 = vector.shape_cast %21 : vector<32xf32> to vector<32x1xf32>
    %23 = vector.broadcast %22 : vector<32x1xf32> to vector<32x256xf32>
    %24 = arith.subf %17, %23 : vector<32x256xf32>
    %25 = math.exp %24 : vector<32x256xf32>
    %cst_15 = arith.constant dense<0.000000e+00> : vector<32xf32>
    %26 = vector.multi_reduction <add>, %25, %cst_15 [1] : vector<32x256xf32> to vector<32xf32>
    %27 = vector.shape_cast %26 : vector<32xf32> to vector<32x1xf32>
    %28 = tpu.reciprocal %27 {approx = true} : vector<32x1xf32> -> vector<32x1xf32>
    %29 = arith.mulf %27, %28 : vector<32x1xf32>
    %cst_16 = arith.constant 2.000000e+00 : f32
    %30 = vector.broadcast %cst_16 : f32 to vector<32x1xf32>
    %31 = arith.subf %30, %29 : vector<32x1xf32>
    %32 = arith.mulf %28, %31 : vector<32x1xf32>
    %33 = vector.broadcast %32 : vector<32x1xf32> to vector<32x256xf32>
    %34 = arith.mulf %25, %33 : vector<32x256xf32>
    %35 = arith.truncf %34 : vector<32x256xf32> to vector<32x256xbf16>
    %cst_17 = arith.constant dense<0xFF800000> : vector<256xf32>
    %36 = vector.multi_reduction <maximumf>, %18, %cst_17 [0] : vector<32x256xf32> to vector<256xf32>
    %37 = vector.shape_cast %36 : vector<256xf32> to vector<1x256xf32>
    %38 = vector.broadcast %37 : vector<1x256xf32> to vector<32x256xf32>
    %39 = arith.subf %18, %38 : vector<32x256xf32>
    %40 = math.exp %39 : vector<32x256xf32>
    %cst_18 = arith.constant dense<0.000000e+00> : vector<256xf32>
    %41 = vector.multi_reduction <add>, %40, %cst_18 [0] : vector<32x256xf32> to vector<256xf32>
    %42 = vector.shape_cast %41 : vector<256xf32> to vector<1x256xf32>
    %43 = tpu.reciprocal %42 {approx = true} : vector<1x256xf32> -> vector<1x256xf32>
    %44 = arith.mulf %42, %43 : vector<1x256xf32>
    %cst_19 = arith.constant 2.000000e+00 : f32
    %45 = vector.broadcast %cst_19 : f32 to vector<1x256xf32>
    %46 = arith.subf %45, %44 : vector<1x256xf32>
    %47 = arith.mulf %43, %46 : vector<1x256xf32>
    %48 = vector.broadcast %47 : vector<1x256xf32> to vector<32x256xf32>
    %49 = arith.mulf %40, %48 : vector<32x256xf32>
    %50 = arith.truncf %49 : vector<32x256xf32> to vector<32x256xbf16>
    "tpu.trace_start"() <{level = 10 : i32, message = "kh,ch->kc"}> : () -> ()
    %cst_20 = arith.constant dense<0.000000e+00> : vector<8x32xf32>
    %51 = tpu.matmul %16, %35, %cst_20 {dimension_numbers = #tpu.dot_dimension_numbers<[1], [1], [0], [0], [0, 0, 1, 0], [], []>} : vector<8x256xbf16>, vector<32x256xbf16>, vector<8x32xf32> -> vector<8x32xf32>
    "tpu.trace_stop"() : () -> ()
    %52 = arith.truncf %51 : vector<8x32xf32> to vector<8x32xbf16>
    %cst_21 = arith.constant dense<0.000000e+00> : vector<8x256xf32>
    %53 = tpu.matmul %52, %50, %cst_21 {dimension_numbers = #tpu.dot_dimension_numbers<[1], [0], [0], [1], [0, 0, 1, 1], [], []>} : vector<8x32xbf16>, vector<32x256xbf16>, vector<8x256xf32> -> vector<8x256xf32>
    %54 = arith.mulf %53, %53 : vector<8x256xf32>
    %cst_22 = arith.constant dense<0.000000e+00> : vector<8xf32>
    %55 = vector.multi_reduction <add>, %54, %cst_22 [1] : vector<8x256xf32> to vector<8xf32>
    %56 = vector.shape_cast %55 : vector<8xf32> to vector<8x1xf32>
    %cst_23 = arith.constant 1.000000e-24 : f32
    %57 = vector.broadcast %cst_23 : f32 to vector<8x1xf32>
    %58 = arith.maximumf %56, %57 : vector<8x1xf32>
    %59 = math.rsqrt %58 : vector<8x1xf32>
    %60 = vector.broadcast %59 : vector<8x1xf32> to vector<8x256xf32>
    %61 = arith.mulf %53, %60 : vector<8x256xf32>
    %cst_24 = arith.constant dense<0xFF800000> : vector<256xf32>
    %62 = vector.multi_reduction <maximumf>, %61, %cst_24 [0] : vector<8x256xf32> to vector<256xf32>
    %63 = vector.shape_cast %62 : vector<256xf32> to vector<1x256xf32>
    %64 = vector.broadcast %63 : vector<1x256xf32> to vector<8x256xf32>
    %65 = arith.subf %61, %64 : vector<8x256xf32>
    %66 = math.exp %65 : vector<8x256xf32>
    %cst_25 = arith.constant dense<0.000000e+00> : vector<256xf32>
    %67 = vector.multi_reduction <add>, %66, %cst_25 [0] : vector<8x256xf32> to vector<256xf32>
    %68 = vector.shape_cast %67 : vector<256xf32> to vector<1x256xf32>
    %69 = tpu.reciprocal %68 {approx = true} : vector<1x256xf32> -> vector<1x256xf32>
    %70 = arith.mulf %68, %69 : vector<1x256xf32>
    %cst_26 = arith.constant 2.000000e+00 : f32
    %71 = vector.broadcast %cst_26 : f32 to vector<1x256xf32>
    %72 = arith.subf %71, %70 : vector<1x256xf32>
    %73 = arith.mulf %69, %72 : vector<1x256xf32>
    %74 = vector.broadcast %73 : vector<1x256xf32> to vector<8x256xf32>
    %75 = arith.mulf %66, %74 : vector<8x256xf32>
    %76 = arith.truncf %75 : vector<8x256xf32> to vector<8x256xbf16>
    %cst_27 = arith.constant dense<0.000000e+00> : vector<8xf32>
    %77 = vector.multi_reduction <add>, %75, %cst_27 [1] : vector<8x256xf32> to vector<8xf32>
    %78 = vector.shape_cast %77 : vector<8xf32> to vector<8x1xf32>
    %79 = tpu.reciprocal %78 {approx = true} : vector<8x1xf32> -> vector<8x1xf32>
    %80 = arith.mulf %78, %79 : vector<8x1xf32>
    %cst_28 = arith.constant 2.000000e+00 : f32
    %81 = vector.broadcast %cst_28 : f32 to vector<8x1xf32>
    %82 = arith.subf %81, %80 : vector<8x1xf32>
    %83 = arith.mulf %79, %82 : vector<8x1xf32>
    "tpu.trace_start"() <{level = 10 : i32, message = "kh,ch->kc"}> : () -> ()
    %cst_29 = arith.constant dense<0.000000e+00> : vector<8x32xf32>
    %84 = tpu.matmul %76, %20, %cst_29 {dimension_numbers = #tpu.dot_dimension_numbers<[1], [1], [0], [0], [0, 0, 1, 0], [], []>} : vector<8x256xbf16>, vector<32x256xbf16>, vector<8x32xf32> -> vector<8x32xf32>
    "tpu.trace_stop"() : () -> ()
    %85 = vector.broadcast %83 : vector<8x1xf32> to vector<8x32xf32>
    %86 = arith.mulf %84, %85 : vector<8x32xf32>
    %87 = arith.mulf %86, %86 : vector<8x32xf32>
    %cst_30 = arith.constant dense<0.000000e+00> : vector<8xf32>
    %88 = vector.multi_reduction <add>, %87, %cst_30 [1] : vector<8x32xf32> to vector<8xf32>
    %89 = vector.shape_cast %88 : vector<8xf32> to vector<8x1xf32>
    %cst_31 = arith.constant 1.000000e-24 : f32
    %90 = vector.broadcast %cst_31 : f32 to vector<8x1xf32>
    %91 = arith.maximumf %89, %90 : vector<8x1xf32>
    %92 = math.rsqrt %91 : vector<8x1xf32>
    %93 = vector.broadcast %92 : vector<8x1xf32> to vector<8x32xf32>
    %94 = arith.mulf %86, %93 : vector<8x32xf32>
    %95 = arith.truncf %94 : vector<8x32xf32> to vector<8x32xbf16>
    "tpu.trace_start"() <{level = 10 : i32, message = "kc,lc->kl"}> : () -> ()
    %cst_32 = arith.constant dense<0.000000e+00> : vector<8x8xf32>
    %96 = tpu.matmul %95, %95, %cst_32 {dimension_numbers = #tpu.dot_dimension_numbers<[1], [1], [0], [0], [0, 0, 1, 0], [], []>} : vector<8x32xbf16>, vector<8x32xbf16>, vector<8x8xf32> -> vector<8x8xf32>
    "tpu.trace_stop"() : () -> ()
    %cst_33 = arith.constant dense<0xFF800000> : vector<8xf32>
    %97 = vector.multi_reduction <maximumf>, %96, %cst_33 [1] : vector<8x8xf32> to vector<8xf32>
    %98 = vector.shape_cast %97 : vector<8xf32> to vector<8x1xf32>
    %99 = vector.broadcast %98 : vector<8x1xf32> to vector<8x8xf32>
    %100 = arith.subf %96, %99 : vector<8x8xf32>
    %101 = math.exp %100 : vector<8x8xf32>
    %cst_34 = arith.constant dense<0.000000e+00> : vector<8xf32>
    %102 = vector.multi_reduction <add>, %101, %cst_34 [1] : vector<8x8xf32> to vector<8xf32>
    %103 = vector.shape_cast %102 : vector<8xf32> to vector<8x1xf32>
    %104 = tpu.reciprocal %103 {approx = true} : vector<8x1xf32> -> vector<8x1xf32>
    %105 = arith.mulf %103, %104 : vector<8x1xf32>
    %cst_35 = arith.constant 2.000000e+00 : f32
    %106 = vector.broadcast %cst_35 : f32 to vector<8x1xf32>
    %107 = arith.subf %106, %105 : vector<8x1xf32>
    %108 = arith.mulf %104, %107 : vector<8x1xf32>
    %109 = vector.broadcast %108 : vector<8x1xf32> to vector<8x8xf32>
    %110 = arith.mulf %101, %109 : vector<8x8xf32>
    %111 = arith.truncf %110 : vector<8x8xf32> to vector<8x8xbf16>
    %cst_36 = arith.constant dense<0.000000e+00> : vector<8x32xf32>
    %112 = tpu.matmul %95, %5, %cst_36 {dimension_numbers = #tpu.dot_dimension_numbers<[1], [0], [0], [1], [0, 0, 1, 1], [], []>} : vector<8x32xbf16>, vector<32x32xbf16>, vector<8x32xf32> -> vector<8x32xf32>
    %113 = arith.truncf %112 : vector<8x32xf32> to vector<8x32xbf16>
    %cst_37 = arith.constant dense<0.000000e+00> : vector<8x32xf32>
    %114 = tpu.matmul %111, %113, %cst_37 {dimension_numbers = #tpu.dot_dimension_numbers<[1], [0], [0], [1], [0, 0, 1, 1], [], []>} : vector<8x8xbf16>, vector<8x32xbf16>, vector<8x32xf32> -> vector<8x32xf32>
    %cst_38 = arith.constant 0.000000e+00 : f32
    %115 = vector.broadcast %cst_38 : f32 to vector<8x32xf32>
    %116 = arith.maximumf %114, %115 : vector<8x32xf32>
    %117 = vector.broadcast %6 : vector<1x32xf32> to vector<8x32xf32>
    %118 = arith.mulf %116, %117 : vector<8x32xf32>
    %119 = vector.broadcast %7 : vector<1x32xf32> to vector<8x32xf32>
    %120 = arith.addf %118, %119 : vector<8x32xf32>
    %121 = arith.addf %120, %94 : vector<8x32xf32>
    %122 = vector.broadcast %8 : vector<1x32xf32> to vector<8x32xf32>
    %123 = arith.mulf %121, %122 : vector<8x32xf32>
    %124 = arith.truncf %123 : vector<8x32xf32> to vector<8x32xbf16>
    "tpu.trace_start"() <{level = 10 : i32, message = "kc,kh->ch"}> : () -> ()
    %cst_39 = arith.constant dense<0.000000e+00> : vector<32x256xf32>
    %125 = tpu.matmul %124, %76, %cst_39 {dimension_numbers = #tpu.dot_dimension_numbers<[0], [0], [1], [1], [0, 1, 1, 1], [], []>} : vector<8x32xbf16>, vector<8x256xbf16>, vector<32x256xf32> -> vector<32x256xf32>
    "tpu.trace_stop"() : () -> ()
    %126 = vector.broadcast %9 : vector<32x1xf32> to vector<32x256xf32>
    %127 = arith.addf %125, %126 : vector<32x256xf32>
    %128 = arith.addf %127, %13 : vector<32x256xf32>
    %c0_40 = arith.constant 0 : index
    %c0_41 = arith.constant 0 : index
    %129 = vector.load %arg8[%c0_40, %c0_41] : memref<32x512xf32, #tpu.memory_space<vmem>>, vector<32x256xf32>
    tpu.vector_store %arg8[%c0_40, %c0_41], %128 {strides = array<i32>} : memref<32x512xf32, #tpu.memory_space<vmem>>, vector<32x256xf32>,
    %130 = vector.extract_strided_slice %0 {offsets = [0, 256], sizes = [32, 256], strides = [1, 1]} : vector<40x512xf32> to vector<32x256xf32>
    %131 = vector.extract_strided_slice %12 {offsets = [0, 256], sizes = [104, 256], strides = [1, 1]} : vector<104x512xf32> to vector<104x256xf32>
    %132 = vector.extract_strided_slice %131 {offsets = [0, 0], sizes = [8, 256], strides = [1, 1]} : vector<104x256xf32> to vector<8x256xf32>
    %133 = arith.truncf %132 : vector<8x256xf32> to vector<8x256xbf16>
    %134 = vector.extract_strided_slice %131 {offsets = [8, 0], sizes = [32, 256], strides = [1, 1]} : vector<104x256xf32> to vector<32x256xf32>
    %135 = vector.extract_strided_slice %131 {offsets = [40, 0], sizes = [32, 256], strides = [1, 1]} : vector<104x256xf32> to vector<32x256xf32>
    %136 = vector.extract_strided_slice %131 {offsets = [72, 0], sizes = [32, 256], strides = [1, 1]} : vector<104x256xf32> to vector<32x256xf32>
    %137 = arith.truncf %136 : vector<32x256xf32> to vector<32x256xbf16>
    %cst_42 = arith.constant dense<0xFF800000> : vector<32xf32>
    %138 = vector.multi_reduction <maximumf>, %134, %cst_42 [1] : vector<32x256xf32> to vector<32xf32>
    %139 = vector.shape_cast %138 : vector<32xf32> to vector<32x1xf32>
    %140 = vector.broadcast %139 : vector<32x1xf32> to vector<32x256xf32>
    %141 = arith.subf %134, %140 : vector<32x256xf32>
    %142 = math.exp %141 : vector<32x256xf32>
    %cst_43 = arith.constant dense<0.000000e+00> : vector<32xf32>
    %143 = vector.multi_reduction <add>, %142, %cst_43 [1] : vector<32x256xf32> to vector<32xf32>
    %144 = vector.shape_cast %143 : vector<32xf32> to vector<32x1xf32>
    %145 = tpu.reciprocal %144 {approx = true} : vector<32x1xf32> -> vector<32x1xf32>
    %146 = arith.mulf %144, %145 : vector<32x1xf32>
    %cst_44 = arith.constant 2.000000e+00 : f32
    %147 = vector.broadcast %cst_44 : f32 to vector<32x1xf32>
    %148 = arith.subf %147, %146 : vector<32x1xf32>
    %149 = arith.mulf %145, %148 : vector<32x1xf32>
    %150 = vector.broadcast %149 : vector<32x1xf32> to vector<32x256xf32>
    %151 = arith.mulf %142, %150 : vector<32x256xf32>
    %152 = arith.truncf %151 : vector<32x256xf32> to vector<32x256xbf16>
    %cst_45 = arith.constant dense<0xFF800000> : vector<256xf32>
    %153 = vector.multi_reduction <maximumf>, %135, %cst_45 [0] : vector<32x256xf32> to vector<256xf32>
    %154 = vector.shape_cast %153 : vector<256xf32> to vector<1x256xf32>
    %155 = vector.broadcast %154 : vector<1x256xf32> to vector<32x256xf32>
    %156 = arith.subf %135, %155 : vector<32x256xf32>
    %157 = math.exp %156 : vector<32x256xf32>
    %cst_46 = arith.constant dense<0.000000e+00> : vector<256xf32>
    %158 = vector.multi_reduction <add>, %157, %cst_46 [0] : vector<32x256xf32> to vector<256xf32>
    %159 = vector.shape_cast %158 : vector<256xf32> to vector<1x256xf32>
    %160 = tpu.reciprocal %159 {approx = true} : vector<1x256xf32> -> vector<1x256xf32>
    %161 = arith.mulf %159, %160 : vector<1x256xf32>
    %cst_47 = arith.constant 2.000000e+00 : f32
    %162 = vector.broadcast %cst_47 : f32 to vector<1x256xf32>
    %163 = arith.subf %162, %161 : vector<1x256xf32>
    %164 = arith.mulf %160, %163 : vector<1x256xf32>
    %165 = vector.broadcast %164 : vector<1x256xf32> to vector<32x256xf32>
    %166 = arith.mulf %157, %165 : vector<32x256xf32>
    %167 = arith.truncf %166 : vector<32x256xf32> to vector<32x256xbf16>
    "tpu.trace_start"() <{level = 10 : i32, message = "kh,ch->kc"}> : () -> ()
    %cst_48 = arith.constant dense<0.000000e+00> : vector<8x32xf32>
    %168 = tpu.matmul %133, %152, %cst_48 {dimension_numbers = #tpu.dot_dimension_numbers<[1], [1], [0], [0], [0, 0, 1, 0], [], []>} : vector<8x256xbf16>, vector<32x256xbf16>, vector<8x32xf32> -> vector<8x32xf32>
    "tpu.trace_stop"() : () -> ()
    %169 = arith.truncf %168 : vector<8x32xf32> to vector<8x32xbf16>
    %cst_49 = arith.constant dense<0.000000e+00> : vector<8x256xf32>
    %170 = tpu.matmul %169, %167, %cst_49 {dimension_numbers = #tpu.dot_dimension_numbers<[1], [0], [0], [1], [0, 0, 1, 1], [], []>} : vector<8x32xbf16>, vector<32x256xbf16>, vector<8x256xf32> -> vector<8x256xf32>
    %171 = arith.mulf %170, %170 : vector<8x256xf32>
    %cst_50 = arith.constant dense<0.000000e+00> : vector<8xf32>
    %172 = vector.multi_reduction <add>, %171, %cst_50 [1] : vector<8x256xf32> to vector<8xf32>
    %173 = vector.shape_cast %172 : vector<8xf32> to vector<8x1xf32>
    %cst_51 = arith.constant 1.000000e-24 : f32
    %174 = vector.broadcast %cst_51 : f32 to vector<8x1xf32>
    %175 = arith.maximumf %173, %174 : vector<8x1xf32>
    %176 = math.rsqrt %175 : vector<8x1xf32>
    %177 = vector.broadcast %176 : vector<8x1xf32> to vector<8x256xf32>
    %178 = arith.mulf %170, %177 : vector<8x256xf32>
    %cst_52 = arith.constant dense<0xFF800000> : vector<256xf32>
    %179 = vector.multi_reduction <maximumf>, %178, %cst_52 [0] : vector<8x256xf32> to vector<256xf32>
    %180 = vector.shape_cast %179 : vector<256xf32> to vector<1x256xf32>
    %181 = vector.broadcast %180 : vector<1x256xf32> to vector<8x256xf32>
    %182 = arith.subf %178, %181 : vector<8x256xf32>
    %183 = math.exp %182 : vector<8x256xf32>
    %cst_53 = arith.constant dense<0.000000e+00> : vector<256xf32>
    %184 = vector.multi_reduction <add>, %183, %cst_53 [0] : vector<8x256xf32> to vector<256xf32>
    %185 = vector.shape_cast %184 : vector<256xf32> to vector<1x256xf32>
    %186 = tpu.reciprocal %185 {approx = true} : vector<1x256xf32> -> vector<1x256xf32>
    %187 = arith.mulf %185, %186 : vector<1x256xf32>
    %cst_54 = arith.constant 2.000000e+00 : f32
    %188 = vector.broadcast %cst_54 : f32 to vector<1x256xf32>
    %189 = arith.subf %188, %187 : vector<1x256xf32>
    %190 = arith.mulf %186, %189 : vector<1x256xf32>
    %191 = vector.broadcast %190 : vector<1x256xf32> to vector<8x256xf32>
    %192 = arith.mulf %183, %191 : vector<8x256xf32>
    %193 = arith.truncf %192 : vector<8x256xf32> to vector<8x256xbf16>
    %cst_55 = arith.constant dense<0.000000e+00> : vector<8xf32>
    %194 = vector.multi_reduction <add>, %192, %cst_55 [1] : vector<8x256xf32> to vector<8xf32>
    %195 = vector.shape_cast %194 : vector<8xf32> to vector<8x1xf32>
    %196 = tpu.reciprocal %195 {approx = true} : vector<8x1xf32> -> vector<8x1xf32>
    %197 = arith.mulf %195, %196 : vector<8x1xf32>
    %cst_56 = arith.constant 2.000000e+00 : f32
    %198 = vector.broadcast %cst_56 : f32 to vector<8x1xf32>
    %199 = arith.subf %198, %197 : vector<8x1xf32>
    %200 = arith.mulf %196, %199 : vector<8x1xf32>
    "tpu.trace_start"() <{level = 10 : i32, message = "kh,ch->kc"}> : () -> ()
    %cst_57 = arith.constant dense<0.000000e+00> : vector<8x32xf32>
    %201 = tpu.matmul %193, %137, %cst_57 {dimension_numbers = #tpu.dot_dimension_numbers<[1], [1], [0], [0], [0, 0, 1, 0], [], []>} : vector<8x256xbf16>, vector<32x256xbf16>, vector<8x32xf32> -> vector<8x32xf32>
    "tpu.trace_stop"() : () -> ()
    %202 = vector.broadcast %200 : vector<8x1xf32> to vector<8x32xf32>
    %203 = arith.mulf %201, %202 : vector<8x32xf32>
    %204 = arith.mulf %203, %203 : vector<8x32xf32>
    %cst_58 = arith.constant dense<0.000000e+00> : vector<8xf32>
    %205 = vector.multi_reduction <add>, %204, %cst_58 [1] : vector<8x32xf32> to vector<8xf32>
    %206 = vector.shape_cast %205 : vector<8xf32> to vector<8x1xf32>
    %cst_59 = arith.constant 1.000000e-24 : f32
    %207 = vector.broadcast %cst_59 : f32 to vector<8x1xf32>
    %208 = arith.maximumf %206, %207 : vector<8x1xf32>
    %209 = math.rsqrt %208 : vector<8x1xf32>
    %210 = vector.broadcast %209 : vector<8x1xf32> to vector<8x32xf32>
    %211 = arith.mulf %203, %210 : vector<8x32xf32>
    %212 = arith.truncf %211 : vector<8x32xf32> to vector<8x32xbf16>
    "tpu.trace_start"() <{level = 10 : i32, message = "kc,lc->kl"}> : () -> ()
    %cst_60 = arith.constant dense<0.000000e+00> : vector<8x8xf32>
    %213 = tpu.matmul %212, %212, %cst_60 {dimension_numbers = #tpu.dot_dimension_numbers<[1], [1], [0], [0], [0, 0, 1, 0], [], []>} : vector<8x32xbf16>, vector<8x32xbf16>, vector<8x8xf32> -> vector<8x8xf32>
    "tpu.trace_stop"() : () -> ()
    %cst_61 = arith.constant dense<0xFF800000> : vector<8xf32>
    %214 = vector.multi_reduction <maximumf>, %213, %cst_61 [1] : vector<8x8xf32> to vector<8xf32>
    %215 = vector.shape_cast %214 : vector<8xf32> to vector<8x1xf32>
    %216 = vector.broadcast %215 : vector<8x1xf32> to vector<8x8xf32>
    %217 = arith.subf %213, %216 : vector<8x8xf32>
    %218 = math.exp %217 : vector<8x8xf32>
    %cst_62 = arith.constant dense<0.000000e+00> : vector<8xf32>
    %219 = vector.multi_reduction <add>, %218, %cst_62 [1] : vector<8x8xf32> to vector<8xf32>
    %220 = vector.shape_cast %219 : vector<8xf32> to vector<8x1xf32>
    %221 = tpu.reciprocal %220 {approx = true} : vector<8x1xf32> -> vector<8x1xf32>
    %222 = arith.mulf %220, %221 : vector<8x1xf32>
    %cst_63 = arith.constant 2.000000e+00 : f32
    %223 = vector.broadcast %cst_63 : f32 to vector<8x1xf32>
    %224 = arith.subf %223, %222 : vector<8x1xf32>
    %225 = arith.mulf %221, %224 : vector<8x1xf32>
    %226 = vector.broadcast %225 : vector<8x1xf32> to vector<8x8xf32>
    %227 = arith.mulf %218, %226 : vector<8x8xf32>
    %228 = arith.truncf %227 : vector<8x8xf32> to vector<8x8xbf16>
    %cst_64 = arith.constant dense<0.000000e+00> : vector<8x32xf32>
    %229 = tpu.matmul %212, %5, %cst_64 {dimension_numbers = #tpu.dot_dimension_numbers<[1], [0], [0], [1], [0, 0, 1, 1], [], []>} : vector<8x32xbf16>, vector<32x32xbf16>, vector<8x32xf32> -> vector<8x32xf32>
    %230 = arith.truncf %229 : vector<8x32xf32> to vector<8x32xbf16>
    %cst_65 = arith.constant dense<0.000000e+00> : vector<8x32xf32>
    %231 = tpu.matmul %228, %230, %cst_65 {dimension_numbers = #tpu.dot_dimension_numbers<[1], [0], [0], [1], [0, 0, 1, 1], [], []>} : vector<8x8xbf16>, vector<8x32xbf16>, vector<8x32xf32> -> vector<8x32xf32>
    %cst_66 = arith.constant 0.000000e+00 : f32
    %232 = vector.broadcast %cst_66 : f32 to vector<8x32xf32>
    %233 = arith.maximumf %231, %232 : vector<8x32xf32>
    %234 = vector.broadcast %6 : vector<1x32xf32> to vector<8x32xf32>
    %235 = arith.mulf %233, %234 : vector<8x32xf32>
    %236 = vector.broadcast %7 : vector<1x32xf32> to vector<8x32xf32>
    %237 = arith.addf %235, %236 : vector<8x32xf32>
    %238 = arith.addf %237, %211 : vector<8x32xf32>
    %239 = vector.broadcast %8 : vector<1x32xf32> to vector<8x32xf32>
    %240 = arith.mulf %238, %239 : vector<8x32xf32>
    %241 = arith.truncf %240 : vector<8x32xf32> to vector<8x32xbf16>
    "tpu.trace_start"() <{level = 10 : i32, message = "kc,kh->ch"}> : () -> ()
    %cst_67 = arith.constant dense<0.000000e+00> : vector<32x256xf32>
    %242 = tpu.matmul %241, %193, %cst_67 {dimension_numbers = #tpu.dot_dimension_numbers<[0], [0], [1], [1], [0, 1, 1, 1], [], []>} : vector<8x32xbf16>, vector<8x256xbf16>, vector<32x256xf32> -> vector<32x256xf32>
    "tpu.trace_stop"() : () -> ()
    %243 = vector.broadcast %9 : vector<32x1xf32> to vector<32x256xf32>
    %244 = arith.addf %242, %243 : vector<32x256xf32>
    %245 = arith.addf %244, %130 : vector<32x256xf32>
    %c0_68 = arith.constant 0 : index
    %c256 = arith.constant 256 : index
    %246 = vector.load %arg8[%c0_68, %c256] : memref<32x512xf32, #tpu.memory_space<vmem>>, vector<32x256xf32>
    tpu.vector_store %arg8[%c0_68, %c256], %245 {strides = array<i32>} : memref<32x512xf32, #tpu.memory_space<vmem>>, vector<32x256xf32>,
    return
  }
  func.func @transform_0(%arg0: i32) -> (i32, i32) {
    %c0_i32 = arith.constant 0 : i32
    %c0_i32_0 = arith.constant 0 : i32
    return %c0_i32, %arg0 : i32, i32
  }
  func.func @transform_1(%arg0: i32) -> (i32, i32) {
    %c0_i32 = arith.constant 0 : i32
    %c0_i32_0 = arith.constant 0 : i32
    %c0_i32_1 = arith.constant 0 : i32
    return %c0_i32, %c0_i32_0 : i32, i32
  }
  func.func @transform_2(%arg0: i32) -> (i32, i32) {
    %c0_i32 = arith.constant 0 : i32
    %c0_i32_0 = arith.constant 0 : i32
    %c0_i32_1 = arith.constant 0 : i32
    return %c0_i32, %c0_i32_0 : i32, i32
  }
  func.func @transform_3(%arg0: i32) -> (i32, i32) {
    %c0_i32 = arith.constant 0 : i32
    %c0_i32_0 = arith.constant 0 : i32
    %c0_i32_1 = arith.constant 0 : i32
    return %c0_i32, %c0_i32_0 : i32, i32
  }
  func.func @transform_4(%arg0: i32) -> (i32, i32) {
    %c0_i32 = arith.constant 0 : i32
    %c0_i32_0 = arith.constant 0 : i32
    %c0_i32_1 = arith.constant 0 : i32
    return %c0_i32, %c0_i32_0 : i32, i32
  }
  func.func @transform_5(%arg0: i32) -> (i32, i32) {
    %c0_i32 = arith.constant 0 : i32
    %c0_i32_0 = arith.constant 0 : i32
    %c0_i32_1 = arith.constant 0 : i32
    return %c0_i32, %c0_i32_0 : i32, i32
  }
  func.func @transform_6(%arg0: i32) -> (i32, i32) {
    %c0_i32 = arith.constant 0 : i32
    %c0_i32_0 = arith.constant 0 : i32
    %c0_i32_1 = arith.constant 0 : i32
    return %c0_i32, %c0_i32_0 : i32, i32
  }
  func.func @transform_7(%arg0: i32) -> (i32, i32) {
    %c0_i32 = arith.constant 0 : i32
    %c0_i32_0 = arith.constant 0 : i32
    return %c0_i32, %arg0 : i32, i32
  }
}

</mosaic_0001>

<bundles_post_ra>
// kernel: tpu_custom_call.1
= control target key start
LH: loop header
LB: loop body
LE: loop exit
PB: predicated region body
PF: predicated region fallthrough
CT: control target
= control target key end

     0   :  { %12 = vsyncpa [#allocation3], 0  ;;  %s2489_s0 = inlined_call_operand.vmem [shape: f32[40,512], index: 0, kind: input, shape index: {}]   ;;  %s2490_s1 = inlined_call_operand.vmem [shape: f32[104,40], index: 1, kind: input, shape index: {}]   ;;  %s2491_s2 = inlined_call_operand.hbm [shape: f32[32,32], index: 2, kind: input, shape index: {}]   ;;  %s2492_s3 = inlined_call_operand.vmem [shape: f32[1,32], index: 3, kind: input, shape index: {}]   ;;  %s2493_s4 = inlined_call_operand.vmem [shape: f32[1,32], index: 4, kind: input, shape index: {}]   ;;  %s2494_s5 = inlined_call_operand.vmem [shape: f32[1,32], index: 5, kind: input, shape index: {}]   ;;  %s2495_s6 = inlined_call_operand.vmem [shape: f32[32,1], index: 6, kind: input, shape index: {}]   ;;  %s2496_s7 = inlined_call_operand.hbm [shape: f32[32,512], index: 7, kind: output, shape index: {}]  }
   0x1   :  { %13 = vsyncpa [#allocation4], 0  ;;  %s1943_s24 = smov [#allocation2]   ;;  %s1895_s28 = scalar_lea.hbm %s2491_s2, 512 }
   0x2   :  { %s23_s25 = sshll.u32 %s1943_s24, 4  ;;  %p1896_p0 = scmp.ne.s32.totalorder %s2491_s2, %s1895_s28  ;;  %s24_s25 = int_to_ptr.vmem [resolvable:$true] %s23_s25 }
   0x3   :  { %p1899_p1 = scmp.lt.u32.totalorder %s1895_s28, %s2491_s2 }
   0x5   :  { %p1901_p2 = pnand %p1899_p1, %p1896_p0 }
   0x7   :  { %1904 = shalt.err (!%p1901_p2)
}
   0x8   :  { %s1905_s10 = scalar_lea.vmem %s24_s25, 512  ;;  %p1910_p4 = scmp.lt.s32.totalorder %s24_s25, %s24_s25 }
   0x9   :  { %p1906_p3 = scmp.ne.s32.totalorder %s24_s25, %s1905_s10  ;;  %p1911_p5 = scmp.lt.s32.totalorder %s1905_s10, %s1905_s10 }
   0xb   :  { %p1912_p6 = por %p1911_p5, %p1910_p4 }
   0xd   :  { %p1913_p7 = pnand %p1912_p6, %p1906_p3 }
   0xf   :  { %1916 = shalt.err (!%p1913_p7)
}
  0x10   :  { %s1944_s11 = smov 128   ;;  %s1945_s12 = smov 8  }
  0x11   :  { %29 = dma.hbm_to_vmem [thread:$0]  %s2491_s2, 512, %s24_s25, [#allocation3], %s1944_s11, %s1944_s11, %s1945_s12  }
  0x12   :  { %1939 = dma.done.wait [#allocation3], 512  }
  0x13   :  { %1940 = vsyncadd [#allocation3], 4294966784  ;;  %v1946_v0 = vmov 0   ;;  %v43_v1 = vld [vmem:[%s2489_s0 + $0x8] sm:$0xff]  ;;  %v42_v3 = vld [vmem:[%s2489_s0] sm:$0xff]  ;;  %vm129_vm0 = vcmask 1043456  }
  0x14   :  { %174 = vmatprep.mubr.bf16.mxu0 %v1946_v0  ;;  %275 = vmatprep.mubr.bf16.mxu1 %v1946_v0  ;;  %v47_v2 = vld [vmem:[%s2489_s0 + $0x28] sm:$0xff]  ;;  %v46_v5 = vld [vmem:[%s2489_s0 + $0x20] sm:$0xff]  ;;  %vm107_vm1 = vcmask 326656   ;;  %v76_v21 = vld [vmem:[%s2490_s1 + $0x10] sm:$0xff]  ;;  %vm599_vm2 = vcmask 261120   ;;  %vm1948_vm3 = vmmov 0  }
  0x15   :  { %v63_v4 = vpack.c.bf16 %v47_v2, %v43_v1  ;;  %v51_v6 = vld [vmem:[%s2489_s0 + $0x48] sm:$0xff]  ;;  %v62_v8 = vpack.c.bf16 %v46_v5, %v42_v3  ;;  %v50_v10 = vld [vmem:[%s2489_s0 + $0x40] sm:$0xff]  ;;  %v77_v22 = vld [vmem:[%s2490_s1 + $0x18] sm:$0xff]  ;;  %vm794_vm4 = vcmask 64512   ;;  %s1949_s16 = smov [#allocation5]  }
  0x16   :  { %v55_v7 = vld [vmem:[%s2489_s0 + $0x68] sm:$0xff]  ;;  %v54_v11 = vld [vmem:[%s2489_s0 + $0x60] sm:$0xff]  ;;  %v88_v23 = vpack.c.bf16 %v77_v22, %v76_v21  ;;  %v80_v27 = vld [vmem:[%s2490_s1 + $0x30] sm:$0xff]  ;;  %s1645_s17 = sshll.u32 %s1949_s16, 4  ;;  %s1646_s17 = int_to_ptr.vmem [resolvable:$true] %s1645_s17 }
  0x17   :  { %v67_v9 = vpack.c.bf16 %v55_v7, %v51_v6  ;;  %v59_v12 = vld [vmem:[%s2489_s0 + $0x88] sm:$0xff]  ;;  %142 = vmatprep.subr.bf16.mxu0 %v63_v4  ;;  %v58_v13 = vld [vmem:[%s2489_s0 + $0x80] sm:$0xff]  ;;  %v66_v14 = vpack.c.bf16 %v54_v11, %v50_v10  ;;  %v81_v28 = vld [vmem:[%s2490_s1 + $0x38] sm:$0xff]  ;;  %s1917_s21 = scalar_lea.vmem %s1646_s17, 2048  ;;  %p1922_p9 = scmp.lt.s32.totalorder %s1646_s17, %s1646_s17 }
  0x18   :  { %143 = vmatpush1.bf16.msra.mxu0 %v62_v8  ;;  %v71_v15 = vpack.c.bf16 %v59_v12, %v59_v12  ;;  %v70_v16 = vpack.c.bf16 %v58_v13, %v58_v13  ;;  %v74_v17 = vld [vmem:[%s2490_s1] sm:$0xff]  ;;  %v75_v18 = vld [vmem:[%s2490_s1 + $0x8] sm:$0xff]  ;;  %v90_v29 = vpack.c.bf16 %v81_v28, %v80_v27  ;;  %v84_v33 = vld [vmem:[%s2490_s1 + $0x50] sm:$0xff]  ;;  %p1918_p8 = scmp.ne.s32.totalorder %s1646_s17, %s1917_s21  ;;  %p1923_p10 = scmp.lt.s32.totalorder %s1917_s21, %s1917_s21 }
  0x19   :  { %144 = vmatprep.subr.bf16.mxu0 %v67_v9  ;;  %v87_v20 = vpack.c.bf16 %v75_v18, %v74_v17  ;;  %v78_v24 = vld [vmem:[%s2490_s1 + $0x20] sm:$0xff]  ;;  %v79_v25 = vld [vmem:[%s2490_s1 + $0x28] sm:$0xff]  ;;  %v85_v34 = vld [vmem:[%s2490_s1 + $0x58] sm:$0xff] }
  0x1a   :  { %v131_v19 = vsel %vm129_vm0, %v70_v16, 0  ;;  %v89_v26 = vpack.c.bf16 %v79_v25, %v78_v24  ;;  %v82_v30 = vld [vmem:[%s2490_s1 + $0x40] sm:$0xff]  ;;  %v83_v31 = vld [vmem:[%s2490_s1 + $0x48] sm:$0xff]  ;;  %v92_v35 = vpack.c.bf16 %v85_v34, %v84_v33  ;;  %v45_v38 = vld [vmem:[%s2489_s0 + $0x18] sm:$0xff]  ;;  %p1924_p11 = por %p1923_p10, %p1922_p9 }
  0x1b   :  { %v91_v32 = vpack.c.bf16 %v83_v31, %v82_v30  ;;  %v86_v36 = vld [vmem:[%s2490_s1 + $0x60] sm:$0xff]  ;;  %v49_v39 = vld [vmem:[%s2489_s0 + $0x38] sm:$0xff]  ;;  %v44_v40 = vld [vmem:[%s2489_s0 + $0x10] sm:$0xff] }
  0x1c   :  { %145 = vmatpush1.bf16.msra.mxu0 %v66_v14  ;;  %v2089_v37 = vpack.c.bf16 %v86_v36, %v86_v36  ;;  %v65_v41 = vpack.c.bf16 %v49_v39, %v45_v38  ;;  %v48_v42 = vld [vmem:[%s2489_s0 + $0x30] sm:$0xff]  ;;  %v53_v43 = vld [vmem:[%s2489_s0 + $0x58] sm:$0xff]  ;;  %p1925_p12 = pnand %p1924_p11, %p1918_p8 }
  0x1d   :  { %1657 = vmatprep.subr.msk.bf16.mxu0 %vm129_vm0, %v71_v15  ;;  %v57_v44 = vld [vmem:[%s2489_s0 + $0x78] sm:$0xff]  ;;  %v64_v45 = vpack.c.bf16 %v48_v42, %v44_v40  ;;  %v52_v47 = vld [vmem:[%s2489_s0 + $0x50] sm:$0xff] }
  0x1e   :  { %v69_v46 = vpack.c.bf16 %v57_v44, %v53_v43  ;;  %v56_v48 = vld [vmem:[%s2489_s0 + $0x70] sm:$0xff]  ;;  %v61_v49 = vld [vmem:[%s2489_s0 + $0x98] sm:$0xff]  ;;  %243 = vmatprep.subr.bf16.mxu1 %v65_v41 }
  0x1f   :  { %v60_v50 = vld [vmem:[%s2489_s0 + $0x90] sm:$0xff]  ;;  %244 = vmatpush1.bf16.msra.mxu1 %v64_v45  ;;  %v68_v51 = vpack.c.bf16 %v56_v48, %v52_v47  ;;  %v73_v52 = vpack.c.bf16 %v61_v49, %v61_v49 }
  0x20   :  { %147 = vmatpush1.bf16.msra.mxu0 %v131_v19  ;;  %245 = vmatprep.subr.bf16.mxu1 %v69_v46  ;;  %v72_v53 = vpack.c.bf16 %v60_v50, %v60_v50 }
  0x22   :  { %v137_v54 = vsel %vm129_vm0, %v72_v53, 0 }
  0x23   :  { %1658 = vmatmul.mubr.msk.bf16.vlgmr.msra.gmra.mrb[0].mxu0 %vm107_vm1, %v87_v20  ;;  %246 = vmatpush1.bf16.msra.mxu1 %v68_v51 }
  0x24   :  { %184 = vmatprep.mubr.bf16.mxu0 %v1946_v0  ;;  %1665 = vmatprep.subr.msk.bf16.mxu1 %vm129_vm0, %v73_v52 }
  0x27   :  { %248 = vmatpush1.bf16.msra.mxu1 %v137_v54 }
  0x2a   :  { %1666 = vmatmul.mubr.msk.bf16.vlgmr.msra.gmra.mrb[0].mxu1 %vm107_vm1, %v87_v20 }
  0x2b   :  { %1659 = vmatmul.mubr.msk.bf16.gmra.mrb[4].mxu0 %vm107_vm1, %v88_v23  ;;  %285 = vmatprep.mubr.bf16.mxu1 %v1946_v0 }
  0x2c   :  { %194 = vmatprep.mubr.bf16.mxu0 %v1946_v0 }
  0x32   :  { %1667 = vmatmul.mubr.msk.bf16.gmra.mrb[4].mxu1 %vm107_vm1, %v88_v23 }
  0x33   :  { %1660 = vmatmul.mubr.msk.bf16.gmra.mrb[8].mxu0 %vm107_vm1, %v89_v26  ;;  %295 = vmatprep.mubr.bf16.mxu1 %v1946_v0 }
  0x34   :  { %204 = vmatprep.mubr.bf16.mxu0 %v1946_v0 }
  0x3a   :  { %1668 = vmatmul.mubr.msk.bf16.gmra.mrb[8].mxu1 %vm107_vm1, %v89_v26 }
  0x3b   :  { %1661 = vmatmul.mubr.msk.bf16.gmra.mrb[12].mxu0 %vm107_vm1, %v90_v29  ;;  %305 = vmatprep.mubr.bf16.mxu1 %v1946_v0 }
  0x3c   :  { %214 = vmatprep.mubr.bf16.mxu0 %v1946_v0 }
  0x42   :  { %1669 = vmatmul.mubr.msk.bf16.gmra.mrb[12].mxu1 %vm107_vm1, %v90_v29 }
  0x43   :  { %1662 = vmatmul.mubr.msk.bf16.gmra.mrb[16].mxu0 %vm107_vm1, %v91_v32  ;;  %315 = vmatprep.mubr.bf16.mxu1 %v1946_v0 }
  0x44   :  { %224 = vmatprep.mubr.bf16.mxu0 %v1946_v0 }
  0x4a   :  { %1670 = vmatmul.mubr.msk.bf16.gmra.mrb[16].mxu1 %vm107_vm1, %v91_v32 }
  0x4b   :  { %1663 = vmatmul.mubr.msk.bf16.gmra.mrb[20].mxu0 %vm107_vm1, %v92_v35  ;;  %325 = vmatprep.mubr.bf16.mxu1 %v1946_v0 }
  0x4c   :  { %234 = vmatprep.mubr.bf16.mxu0 %v1946_v0 }
  0x52   :  { %1671 = vmatmul.mubr.msk.bf16.gmra.mrb[20].mxu1 %vm107_vm1, %v92_v35 }
  0x53   :  { %1664 = vmatmul.mubr.msk.bf16.gmra.mrb[24].mxu0 %vm107_vm1, %v2089_v37  ;;  %335 = vmatprep.mubr.bf16.mxu1 %v1946_v0 }
  0x5a   :  { %1672 = vmatmul.mubr.msk.bf16.gmra.mrb[24].mxu1 %vm107_vm1, %v2089_v37 }
  0x5b   :  { %635 = vmatprep.mubr.bf16.mxu1 %v1946_v0 }
  0xf6   :  { %v2133_v55 = vpop.f32.mrb[0].mxu0 }
  0xf7   :  { %v178_v56 = vpop.f32.mrb[1].mxu0 }
  0xf8   :  { %v345_v57 = vmax.f32 %v178_v56, 0.0  ;;  %v2135_v58 = vpop.f32.mrb[2].mxu0 }
  0xf9   :  { %v348_v59 = vmax.f32 %v2135_v58, 0.0  ;;  %v2138_v60 = vpop.f32.mrb[3].mxu0 }
  0xfa   :  { %v397_v61 = vpack.c.bf16 %v345_v57, %v345_v57  ;;  %v349_v62 = vmax.f32 %v2138_v60, 0.0 }
  0xfc   :  { %590 = vmatprep.mubr.bf16.mxu0 %v397_v61  ;;  %v402_v63 = vmax.f32 %v348_v59, %v349_v62 }
  0xfe   :  { %403 = vmax.xlane.f32.xlu0 %v402_v63  ;;  %v2147_v1 = vpop.f32.mrb[4].mxu0 }
  0xff   :  { %v352_v2 = vmax.f32 %v2147_v1, 0.0  ;;  %v2150_v3 = vpop.f32.mrb[5].mxu0 }
 0x100   :  { %v353_v4 = vmax.f32 %v2150_v3, 0.0  ;;  %v2153_v5 = vpop.f32.mrb[6].mxu0 }
 0x101   :  { %v356_v6 = vmax.f32 %v2153_v5, 0.0  ;;  %v2156_v7 = vpop.f32.mrb[7].mxu0 }
 0x102   :  { %v357_v8 = vmax.f32 %v2156_v7, 0.0  ;;  %v405_v9 = vmax.f32 %v352_v2, %v353_v4 }
 0x104   :  { %406 = vmax.xlane.f32.xlu0 %v405_v9  ;;  %v408_v10 = vmax.f32 %v356_v6, %v357_v8 }
 0x106   :  { %409 = vmax.xlane.f32.xlu1 %v408_v10  ;;  %v2169_v11 = vpop.f32.mrb[8].mxu0 }
 0x107   :  { %v360_v12 = vmax.f32 %v2169_v11, 0.0  ;;  %v2172_v13 = vpop.f32.mrb[9].mxu0 }
 0x108   :  { %v361_v14 = vmax.f32 %v2172_v13, 0.0  ;;  %v200_v15 = vpop.f32.mrb[10].mxu0 }
 0x109   :  { %v202_v16 = vpop.f32.mrb[11].mxu0  ;;  %v364_v21 = vmax.f32 %v200_v15, 0.0 }
 0x10a   :  { %v411_v17 = vmax.f32 %v360_v12, %v361_v14  ;;  %v365_v24 = vmax.f32 %v202_v16, 0.0 }
 0x10c   :  { %412 = vmax.xlane.f32.xlu1 %v411_v17 }
 0x10e   :  { %v206_v18 = vpop.f32.mrb[12].mxu0 }
 0x10f   :  { %v208_v19 = vpop.f32.mrb[13].mxu0  ;;  %v368_v28 = vmax.f32 %v206_v18, 0.0 }
 0x110   :  { %v210_v20 = vpop.f32.mrb[14].mxu0  ;;  %v369_v29 = vmax.f32 %v208_v19, 0.0 }
 0x111   :  { %v372_v22 = vmax.f32 %v210_v20, 0.0  ;;  %v212_v23 = vpop.f32.mrb[15].mxu0 }
 0x112   :  { %v373_v25 = vmax.f32 %v212_v23, 0.0 }
 0x113   :  { %v478_v26 = vmax.f32 %v364_v21, %v372_v22 }
 0x114   :  { %v487_v27 = vmax.f32 %v365_v24, %v373_v25 }
 0x116   :  { %v216_v30 = vpop.f32.mrb[16].mxu0 }
 0x117   :  { %v376_v31 = vmax.f32 %v216_v30, 0.0  ;;  %v218_v32 = vpop.f32.mrb[17].mxu0 }
 0x118   :  { %v377_v33 = vmax.f32 %v218_v32, 0.0 }
 0x119   :  { %v479_v34 = vmax.f32 %v368_v28, %v376_v31 }
 0x11a   :  { %v488_v35 = vmax.f32 %v369_v29, %v377_v33 }
 0x11b   :  { %v480_v36 = vmax.f32 %v478_v26, %v479_v34 }
 0x11c   :  { %v489_v37 = vmax.f32 %v487_v27, %v488_v35 }
 0x11d   :  { %v481_v38 = vrot.slane %v480_v36, 4 }
 0x11e   :  { %v490_v39 = vrot.slane %v489_v37, 4 }
 0x11f   :  { %v482_v40 = vmax.f32 %v480_v36, %v481_v38 }
 0x120   :  { %v491_v41 = vmax.f32 %v489_v37, %v490_v39 }
 0x121   :  { %v483_v42 = vrot.slane %v482_v40, 2 }
 0x122   :  { %v492_v43 = vrot.slane %v491_v41, 2 }
 0x123   :  { %v484_v44 = vmax.f32 %v482_v40, %v483_v42 }
 0x124   :  { %v493_v45 = vmax.f32 %v491_v41, %v492_v43 }
 0x125   :  { %v485_v46 = vrot.slane %v484_v44, 1 }
 0x126   :  { %v494_v47 = vrot.slane %v493_v45, 1 }
 0x127   :  { %v486_v48 = vmax.f32 %v484_v44, %v485_v46 }
 0x128   :  { %v495_v49 = vmax.f32 %v493_v45, %v494_v47 }
 0x129   :  { %v496_v50 = vsub.f32 %v364_v21, %v486_v48  ;;  %v498_v51 = vsub.f32 %v368_v28, %v486_v48  ;;  %v500_v52 = vsub.f32 %v372_v22, %v486_v48  ;;  %v502_v53 = vsub.f32 %v376_v31, %v486_v48 }
 0x12a   :  { %v497_v54 = vsub.f32 %v365_v24, %v495_v49  ;;  %v499_v56 = vsub.f32 %v369_v29, %v495_v49  ;;  %v501_v57 = vsub.f32 %v373_v25, %v495_v49  ;;  %v503_v61 = vsub.f32 %v377_v33, %v495_v49 }
 0x12b   :  { %v504_v63 = vmul.f32 1.442695, %v496_v50  ;;  %v508_v9 = vmul.f32 1.442695, %v498_v51  ;;  %v512_v10 = vmul.f32 1.442695, %v500_v52 }
 0x12c   :  { %v516_v15 = vmul.f32 1.442695, %v502_v53  ;;  %v506_v16 = vmul.f32 1.442695, %v497_v54  ;;  %v510_v17 = vmul.f32 1.442695, %v499_v56 }
 0x12d   :  { %1755 = vpow2.f32 %v504_v63  ;;  %v514_v18 = vmul.f32 1.442695, %v501_v57  ;;  %v518_v19 = vmul.f32 1.442695, %v503_v61 }
 0x12e   :  { %1757 = vpow2.f32 %v508_v9 }
 0x12f   :  { %1759 = vpow2.f32 %v512_v10 }
 0x130   :  { %1761 = vpow2.f32 %v516_v15 }
 0x131   :  { %1763 = vpow2.f32 %v506_v16 }
 0x132   :  { %1765 = vpow2.f32 %v510_v17 }
 0x133   :  { %1767 = vpow2.f32 %v514_v18 }
 0x134   :  { %1769 = vpow2.f32 %v518_v19 }
 0x137   :  { %v1756_v20 = vpop.eup %1755 }
 0x138   :  { %v1758_v21 = vpop.eup %1757 }
 0x139   :  { %v1760_v22 = vpop.eup %1759  ;;  %v520_v23 = vadd.f32 %v1758_v21, %v1756_v20 }
 0x13a   :  { %v1762_v24 = vpop.eup %1761 }
 0x13b   :  { %v1764_v25 = vpop.eup %1763  ;;  %v521_v26 = vadd.f32 %v1760_v22, %v520_v23 }
 0x13c   :  { %v1766_v27 = vpop.eup %1765 }
 0x13d   :  { %v522_v28 = vadd.f32 %v1762_v24, %v521_v26  ;;  %v529_v29 = vadd.f32 %v1766_v27, %v1764_v25  ;;  %v1768_v30 = vpop.eup %1767 }
 0x13e   :  { %v1770_v33 = vpop.eup %1769 }
 0x13f   :  { %v523_v31 = vrot.slane %v522_v28, 4  ;;  %v530_v32 = vadd.f32 %v1768_v30, %v529_v29 }
 0x141   :  { %v524_v34 = vadd.f32 %v523_v31, %v522_v28  ;;  %v531_v35 = vadd.f32 %v1770_v33, %v530_v32 }
 0x143   :  { %v525_v36 = vrot.slane %v524_v34, 2  ;;  %v532_v37 = vrot.slane %v531_v35, 4 }
 0x145   :  { %v526_v38 = vadd.f32 %v525_v36, %v524_v34  ;;  %v533_v39 = vadd.f32 %v532_v37, %v531_v35  ;;  %v220_v36 = vpop.f32.mrb[18].mxu0 }
 0x146   :  { %v380_v37 = vmax.f32 %v220_v36, 0.0 }
 0x147   :  { %v527_v40 = vrot.slane %v526_v38, 1  ;;  %v534_v41 = vrot.slane %v533_v39, 2 }
 0x149   :  { %v528_v42 = vadd.f32 %v527_v40, %v526_v38  ;;  %v535_v43 = vadd.f32 %v534_v41, %v533_v39  ;;  %v222_v38 = vpop.f32.mrb[19].mxu0 }
 0x14a   :  { %v381_v39 = vmax.f32 %v222_v38, 0.0  ;;  %v226_v40 = vpop.f32.mrb[20].mxu0 }
 0x14b   :  { %1771 = vrcp.f32 %v528_v42  ;;  %v536_v44 = vrot.slane %v535_v43, 1  ;;  %v384_v41 = vmax.f32 %v226_v40, 0.0 }
 0x14d   :  { %v537_v45 = vadd.f32 %v536_v44, %v535_v43 }
 0x14f   :  { %1773 = vrcp.f32 %v537_v45 }
 0x155   :  { %v1772_v46 = vpop.eup %1771 }
 0x156   :  { %v540_v47 = vmul.f32 %v1772_v46, %v528_v42  ;;  %v228_v42 = vpop.f32.mrb[21].mxu0 }
 0x157   :  { %v385_v43 = vmax.f32 %v228_v42, 0.0  ;;  %v230_v44 = vpop.f32.mrb[22].mxu0 }
 0x158   :  { %v542_v48 = vsub.f32 2.0, %v540_v47  ;;  %v232_v47 = vpop.f32.mrb[23].mxu0 }
 0x159   :  { %v1774_v49 = vpop.eup %1773 }
 0x15a   :  { %v541_v50 = vmul.f32 %v1774_v49, %v537_v45  ;;  %v544_v51 = vmul.f32 %v1772_v46, %v542_v48  ;;  %v398_v45 = vpack.c.bf16 %v384_v41, %v380_v37  ;;  %v388_v46 = vmax.f32 %v230_v44, 0.0 }
 0x15b   :  { %v399_v48 = vpack.c.bf16 %v385_v43, %v381_v39 }
 0x15c   :  { %v543_v52 = vsub.f32 2.0, %v541_v50  ;;  %v546_v53 = vmul.f32 %v1756_v20, %v544_v51  ;;  %v548_v54 = vmul.f32 %v1758_v21, %v544_v51  ;;  %v550_v56 = vmul.f32 %v1760_v22, %v544_v51  ;;  %v236_v50 = vpop.f32.mrb[24].mxu0 }
 0x15d   :  { %v552_v57 = vmul.f32 %v1762_v24, %v544_v51  ;;  %v392_v51 = vmax.f32 %v236_v50, 0.0 }
 0x15e   :  { %v545_v61 = vmul.f32 %v1774_v49, %v543_v52  ;;  %v554_v63 = vpack.c.bf16 %v548_v54, %v546_v53  ;;  %v389_v49 = vmax.f32 %v232_v47, 0.0  ;;  %v238_v52 = vpop.f32.mrb[25].mxu0 }
 0x15f   :  { %v556_v9 = vpack.c.bf16 %v552_v57, %v550_v56  ;;  %v393_v53 = vmax.f32 %v238_v52, 0.0  ;;  %v240_v54 = vpop.f32.mrb[26].mxu0  ;;  %v400_v56 = vpack.c.bf16 %v392_v51, %v388_v46 }
 0x160   :  { %v547_v10 = vmul.f32 %v1764_v25, %v545_v61  ;;  %v549_v15 = vmul.f32 %v1766_v27, %v545_v61  ;;  %v551_v16 = vmul.f32 %v1768_v30, %v545_v61  ;;  %v553_v17 = vmul.f32 %v1770_v33, %v545_v61  ;;  %v241_v57 = vpop.f32.mrb[27].mxu0 }
 0x161   :  { %v401_v61 = vpack.c.bf16 %v393_v53, %v389_v49 }
 0x162   :  { %v555_v18 = vpack.c.bf16 %v549_v15, %v547_v10  ;;  %v557_v19 = vpack.c.bf16 %v553_v17, %v551_v16 }
 0x164   :  { %603 = vmatprep.subr.bf16.mxu1 %v555_v18 }
 0x165   :  { %604 = vmatpush1.bf16.msra.mxu1 %v554_v63 }
 0x166   :  { %605 = vmatprep.subr.bf16.mxu1 %v557_v19 }
 0x169   :  { %606 = vmatpush1.bf16.msra.mxu1 %v556_v9 }
 0x18b   :  { %v404_v23 = vpop.xlane.xlu0 %403 }
 0x18c   :  { %v414_v20 = vsub.f32 %v348_v59, %v404_v23  ;;  %v415_v21 = vsub.f32 %v349_v62, %v404_v23 }
 0x18e   :  { %v422_v22 = vmul.f32 1.442695, %v414_v20  ;;  %v424_v24 = vmul.f32 1.442695, %v415_v21 }
 0x190   :  { %1775 = vpow2.f32 %v422_v22 }
 0x191   :  { %1777 = vpow2.f32 %v424_v24  ;;  %v407_v25 = vpop.xlane.xlu0 %406 }
 0x192   :  { %v416_v26 = vsub.f32 %v352_v2, %v407_v25  ;;  %v417_v27 = vsub.f32 %v353_v4, %v407_v25 }
 0x193   :  { %v410_v28 = vpop.xlane.xlu1 %409 }
 0x194   :  { %v426_v29 = vmul.f32 1.442695, %v416_v26  ;;  %v428_v30 = vmul.f32 1.442695, %v417_v27  ;;  %v418_v58 = vsub.f32 %v356_v6, %v410_v28  ;;  %v419_v59 = vsub.f32 %v357_v8, %v410_v28 }
 0x196   :  { %1779 = vpow2.f32 %v426_v29  ;;  %v430_v60 = vmul.f32 1.442695, %v418_v58  ;;  %v432_v62 = vmul.f32 1.442695, %v419_v59 }
 0x197   :  { %1781 = vpow2.f32 %v428_v30 }
 0x198   :  { %1783 = vpow2.f32 %v430_v60 }
 0x199   :  { %1785 = vpow2.f32 %v432_v62  ;;  %v413_v1 = vpop.xlane.xlu1 %412 }
 0x19a   :  { %v1776_v2 = vpop.eup %1775  ;;  %v420_v3 = vsub.f32 %v360_v12, %v413_v1  ;;  %v421_v4 = vsub.f32 %v361_v14, %v413_v1 }
 0x19b   :  { %v1778_v31 = vpop.eup %1777 }
 0x19c   :  { %v434_v5 = vmul.f32 1.442695, %v420_v3  ;;  %v436_v6 = vmul.f32 1.442695, %v421_v4  ;;  %v438_v32 = vadd.f32 %v1778_v31, %v1776_v2 }
 0x19e   :  { %1787 = vpow2.f32 %v434_v5  ;;  %439 = vadd.xlane.f32.xlu0 %v438_v32 }
 0x19f   :  { %1789 = vpow2.f32 %v436_v6 }
 0x1a0   :  { %v1780_v7 = vpop.eup %1779 }
 0x1a1   :  { %v1782_v8 = vpop.eup %1781 }
 0x1a2   :  { %v2198_v33 = vpop.eup %1783  ;;  %v441_v34 = vadd.f32 %v1782_v8, %v1780_v7 }
 0x1a3   :  { %v2200_v35 = vpop.eup %1785 }
 0x1a4   :  { %442 = vadd.xlane.f32.xlu1 %v441_v34  ;;  %v444_v11 = vadd.f32 %v2200_v35, %v2198_v33 }
 0x1a6   :  { %445 = vadd.xlane.f32.xlu0 %v444_v11  ;;  %v2207_v11 = vpop.f32.mrb[0].mxu1 }
 0x1a8   :  { %v1788_v12 = vpop.eup %1787 }
 0x1a9   :  { %v1790_v13 = vpop.eup %1789 }
 0x1aa   :  { %v447_v14 = vadd.f32 %v1790_v13, %v1788_v12 }
 0x1ac   :  { %448 = vadd.xlane.f32.xlu1 %v447_v14  ;;  %v2209_v14 = vpop.f32.mrb[1].mxu1 }
 0x22b   :  { %v440_v63 = vpop.xlane.xlu0 %439 }
 0x22c   :  { %1791 = vrcp.f32 %v440_v63 }
 0x231   :  { %v443_v9 = vpop.xlane.xlu1 %442 }
 0x232   :  { %1793 = vrcp.f32 %v443_v9 }
 0x233   :  { %v446_v10 = vpop.xlane.xlu0 %445 }
 0x234   :  { %1795 = vrcp.f32 %v446_v10 }
 0x236   :  { %v1792_v15 = vpop.eup %1791 }
 0x237   :  { %v454_v16 = vmul.f32 %v1792_v15, %v440_v63 }
 0x239   :  { %v449_v17 = vpop.xlane.xlu1 %448  ;;  %v458_v18 = vsub.f32 2.0, %v454_v16 }
 0x23a   :  { %1797 = vrcp.f32 %v449_v17 }
 0x23b   :  { %v462_v21 = vmul.f32 %v1792_v15, %v458_v18 }
 0x23c   :  { %v1794_v19 = vpop.eup %1793 }
 0x23d   :  { %v455_v23 = vmul.f32 %v1794_v19, %v443_v9  ;;  %v466_v26 = vmul.f32 %v1776_v2, %v462_v21  ;;  %v467_v29 = vmul.f32 %v1778_v31, %v462_v21  ;;  %v344_v31 = vmax.f32 %v2133_v55, 0.0 }
 0x23e   :  { %v1796_v20 = vpop.eup %1795 }
 0x23f   :  { %v459_v22 = vsub.f32 2.0, %v455_v23  ;;  %v456_v24 = vmul.f32 %v1796_v20, %v446_v10 }
 0x241   :  { %v463_v25 = vmul.f32 %v1794_v19, %v459_v22  ;;  %v460_v28 = vsub.f32 2.0, %v456_v24 }
 0x243   :  { %v468_v27 = vmul.f32 %v1780_v7, %v463_v25  ;;  %v469_v30 = vmul.f32 %v1782_v8, %v463_v25  ;;  %v464_v1 = vmul.f32 %v1796_v20, %v460_v28  ;;  %v396_v8 = vpack.c.bf16 %v344_v31, %v344_v31 }
 0x244   :  { %v1798_v58 = vpop.eup %1797 }
 0x245   :  { %v457_v59 = vmul.f32 %v1798_v58, %v449_v17  ;;  %v475_v60 = vpack.c.bf16 %v469_v30, %v467_v29  ;;  %v474_v62 = vpack.c.bf16 %v468_v27, %v466_v26  ;;  %v470_v5 = vmul.f32 %v2198_v33, %v464_v1  ;;  %v2211_v33 = vpop.f32.mrb[2].mxu1 }
 0x246   :  { %v471_v32 = vmul.f32 %v2200_v35, %v464_v1  ;;  %v2213_v35 = vpop.f32.mrb[3].mxu1 }
 0x247   :  { %v461_v3 = vsub.f32 2.0, %v457_v59  ;;  %558 = vmatprep.subr.bf16.mxu0 %v475_v60 }
 0x248   :  { %559 = vmatpush1.bf16.xpose.msra.mxu0 %v474_v62 }
 0x249   :  { %v465_v4 = vmul.f32 %v1798_v58, %v461_v3 }
 0x24b   :  { %v472_v6 = vmul.f32 %v1788_v12, %v465_v4  ;;  %v473_v34 = vmul.f32 %v1790_v13, %v465_v4  ;;  %v2215_v12 = vpop.f32.mrb[4].mxu1 }
 0x24c   :  { %v2217_v13 = vpop.f32.mrb[5].mxu1 }
 0x24d   :  { %v477_v2 = vpack.c.bf16 %v473_v34, %v471_v32  ;;  %v476_v7 = vpack.c.bf16 %v472_v6, %v470_v5  ;;  %v2219_v36 = vpop.f32.mrb[6].mxu1 }
 0x24e   :  { %v2221_v55 = vpop.f32.mrb[7].mxu1 }
 0x24f   :  { %560 = vmatprep.subr.bf16.mxu0 %v477_v2  ;;  %v2223_v37 = vpop.f32.mrb[8].mxu1 }
 0x250   :  { %561 = vmatpush1.bf16.xpose.msra.mxu0 %v476_v7  ;;  %v2225_v38 = vpop.f32.mrb[9].mxu1 }
 0x251   :  { %702 = vmatprep.subr.bf16.mxu0 %v399_v48  ;;  %v301_v39 = vpop.f32.mrb[10].mxu1 }
 0x252   :  { %v303_v40 = vpop.f32.mrb[11].mxu1  ;;  %v366_v42 = vmax.f32 %v301_v39, 0.0 }
 0x253   :  { %v307_v41 = vpop.f32.mrb[12].mxu1  ;;  %v367_v44 = vmax.f32 %v303_v40, 0.0 }
 0x254   :  { %v309_v43 = vpop.f32.mrb[13].mxu1  ;;  %v370_v46 = vmax.f32 %v307_v41, 0.0 }
 0x255   :  { %v371_v49 = vmax.f32 %v309_v43, 0.0 }
 0x257   :  { %591 = vmatmul.mubr.bf16.vlgmr.msra.gmra.mrb[28].mxu0 %v396_v8 }
 0x258   :  { %703 = vmatpush1.bf16.xpose.msra.mxu0 %v398_v45  ;;  %v311_v45 = vpop.f32.mrb[14].mxu1 }
 0x259   :  { %704 = vmatprep.subr.bf16.mxu0 %v401_v61  ;;  %v374_v47 = vmax.f32 %v311_v45, 0.0  ;;  %v313_v48 = vpop.f32.mrb[15].mxu1 }
 0x25a   :  { %v375_v50 = vmax.f32 %v313_v48, 0.0  ;;  %v317_v51 = vpop.f32.mrb[16].mxu1 }
 0x25b   :  { %v1120_v52 = vmax.f32 %v366_v42, %v374_v47  ;;  %v378_v53 = vmax.f32 %v317_v51, 0.0  ;;  %v319_v54 = vpop.f32.mrb[17].mxu1 }
 0x25c   :  { %v379_v57 = vmax.f32 %v319_v54, 0.0  ;;  %v321_v61 = vpop.f32.mrb[18].mxu1 }
 0x25d   :  { %v1121_v63 = vmax.f32 %v370_v46, %v378_v53  ;;  %v382_v9 = vmax.f32 %v321_v61, 0.0  ;;  %v323_v10 = vpop.f32.mrb[19].mxu1 }
 0x25e   :  { %v1130_v15 = vmax.f32 %v371_v49, %v379_v57  ;;  %v383_v16 = vmax.f32 %v323_v10, 0.0  ;;  %v327_v17 = vpop.f32.mrb[20].mxu1 }
 0x25f   :  { %v1122_v18 = vmax.f32 %v1120_v52, %v1121_v63  ;;  %v386_v19 = vmax.f32 %v327_v17, 0.0  ;;  %v329_v23 = vpop.f32.mrb[21].mxu1 }
 0x260   :  { %705 = vmatpush1.bf16.xpose.msra.mxu0 %v400_v56  ;;  %v1129_v56 = vmax.f32 %v367_v44, %v375_v50  ;;  %v387_v21 = vmax.f32 %v329_v23, 0.0  ;;  %v331_v22 = vpop.f32.mrb[22].mxu1 }
 0x261   :  { %v1123_v24 = vrot.slane %v1122_v18, 4  ;;  %v2227_v25 = vpack.c.bf16 %v386_v19, %v382_v9  ;;  %v390_v26 = vmax.f32 %v331_v22, 0.0  ;;  %v333_v27 = vpop.f32.mrb[23].mxu1 }
 0x262   :  { %v1131_v20 = vmax.f32 %v1129_v56, %v1130_v15  ;;  %v2229_v29 = vpack.c.bf16 %v387_v21, %v383_v16  ;;  %v391_v30 = vmax.f32 %v333_v27, 0.0  ;;  %v337_v58 = vpop.f32.mrb[24].mxu1 }
 0x263   :  { %v1124_v59 = vmax.f32 %v1122_v18, %v1123_v24  ;;  %v394_v60 = vmax.f32 %v337_v58, 0.0  ;;  %v339_v62 = vpop.f32.mrb[25].mxu1 }
 0x264   :  { %v1132_v28 = vrot.slane %v1131_v20, 4  ;;  %v395_v3 = vmax.f32 %v339_v62, 0.0  ;;  %v341_v4 = vpop.f32.mrb[26].mxu1 }
 0x265   :  { %v1125_v5 = vrot.slane %v1124_v59, 2  ;;  %v2231_v6 = vpack.c.bf16 %v394_v60, %v390_v26  ;;  %v342_v32 = vpop.f32.mrb[27].mxu1 }
 0x266   :  { %v1133_v1 = vmax.f32 %v1131_v20, %v1132_v28  ;;  %v2233_v2 = vpack.c.bf16 %v395_v3, %v391_v30 }
 0x267   :  { %v1126_v7 = vmax.f32 %v1124_v59, %v1125_v5 }
 0x268   :  { %v1134_v34 = vrot.slane %v1133_v1, 2 }
 0x269   :  { %v1127_v8 = vrot.slane %v1126_v7, 1 }
 0x26a   :  { %v1135_v31 = vmax.f32 %v1133_v1, %v1134_v34 }
 0x26b   :  { %v1128_v40 = vmax.f32 %v1126_v7, %v1127_v8 }
 0x26c   :  { %v1136_v39 = vrot.slane %v1135_v31, 1 }
 0x26d   :  { %v1138_v43 = vsub.f32 %v366_v42, %v1128_v40  ;;  %v1140_v45 = vsub.f32 %v370_v46, %v1128_v40  ;;  %v1142_v48 = vsub.f32 %v374_v47, %v1128_v40  ;;  %v1144_v51 = vsub.f32 %v378_v53, %v1128_v40 }
 0x26e   :  { %v1137_v41 = vmax.f32 %v1135_v31, %v1136_v39 }
 0x26f   :  { %v1146_v63 = vmul.f32 1.442695, %v1138_v43  ;;  %v1150_v9 = vmul.f32 1.442695, %v1140_v45  ;;  %v1154_v10 = vmul.f32 1.442695, %v1142_v48 }
 0x270   :  { %v1139_v52 = vsub.f32 %v367_v44, %v1137_v41  ;;  %v1141_v54 = vsub.f32 %v371_v49, %v1137_v41  ;;  %v1143_v56 = vsub.f32 %v375_v50, %v1137_v41  ;;  %v1145_v61 = vsub.f32 %v379_v57, %v1137_v41 }
 0x271   :  { %v1158_v15 = vmul.f32 1.442695, %v1144_v51  ;;  %1799 = vpow2.f32 %v1146_v63 }
 0x272   :  { %v1148_v16 = vmul.f32 1.442695, %v1139_v52  ;;  %1801 = vpow2.f32 %v1150_v9  ;;  %v1152_v17 = vmul.f32 1.442695, %v1141_v54  ;;  %v1156_v26 = vmul.f32 1.442695, %v1143_v56 }
 0x273   :  { %1803 = vpow2.f32 %v1154_v10  ;;  %v1160_v27 = vmul.f32 1.442695, %v1145_v61 }
 0x274   :  { %1805 = vpow2.f32 %v1158_v15 }
 0x275   :  { %1807 = vpow2.f32 %v1148_v16 }
 0x276   :  { %1809 = vpow2.f32 %v1152_v17 }
 0x277   :  { %1811 = vpow2.f32 %v1156_v26 }
 0x278   :  { %1813 = vpow2.f32 %v1160_v27 }
 0x27b   :  { %v1800_v42 = vpop.eup %1799 }
 0x27c   :  { %v1802_v46 = vpop.eup %1801 }
 0x27d   :  { %v1804_v47 = vpop.eup %1803  ;;  %v1162_v53 = vadd.f32 %v1802_v46, %v1800_v42 }
 0x27e   :  { %v1806_v44 = vpop.eup %1805 }
 0x27f   :  { %v1808_v49 = vpop.eup %1807  ;;  %v1163_v50 = vadd.f32 %v1804_v47, %v1162_v53 }
 0x280   :  { %v1810_v57 = vpop.eup %1809 }
 0x281   :  { %v1164_v18 = vadd.f32 %v1806_v44, %v1163_v50  ;;  %v1171_v19 = vadd.f32 %v1810_v57, %v1808_v49  ;;  %v2236_v28 = vpop.eup %1811 }
 0x282   :  { %v2239_v58 = vpop.eup %1813 }
 0x283   :  { %v1172_v30 = vadd.f32 %v2236_v28, %v1171_v19  ;;  %v1165_v59 = vrot.slane %v1164_v18, 4 }
 0x285   :  { %v1173_v60 = vadd.f32 %v2239_v58, %v1172_v30  ;;  %v1166_v62 = vadd.f32 %v1165_v59, %v1164_v18 }
 0x287   :  { %v1174_v1 = vrot.slane %v1173_v60, 4  ;;  %v1167_v3 = vrot.slane %v1166_v62, 2 }
 0x289   :  { %v1175_v4 = vadd.f32 %v1174_v1, %v1173_v60  ;;  %v1168_v5 = vadd.f32 %v1167_v3, %v1166_v62 }
 0x28b   :  { %v1176_v32 = vrot.slane %v1175_v4, 2  ;;  %v1169_v34 = vrot.slane %v1168_v5, 1 }
 0x28d   :  { %v1177_v7 = vadd.f32 %v1176_v32, %v1175_v4  ;;  %v1170_v31 = vadd.f32 %v1169_v34, %v1168_v5 }
 0x28f   :  { %v1178_v8 = vrot.slane %v1177_v7, 1  ;;  %1815 = vrcp.f32 %v1170_v31 }
 0x291   :  { %v1179_v39 = vadd.f32 %v1178_v8, %v1177_v7 }
 0x293   :  { %1817 = vrcp.f32 %v1179_v39 }
 0x299   :  { %v1816_v40 = vpop.eup %1815 }
 0x29a   :  { %v1182_v45 = vmul.f32 %v1816_v40, %v1170_v31 }
 0x29c   :  { %v1184_v51 = vsub.f32 2.0, %v1182_v45 }
 0x29d   :  { %v1818_v41 = vpop.eup %1817 }
 0x29e   :  { %v1183_v43 = vmul.f32 %v1818_v41, %v1179_v39  ;;  %v1186_v54 = vmul.f32 %v1816_v40, %v1184_v51 }
 0x2a0   :  { %v1185_v48 = vsub.f32 2.0, %v1183_v43  ;;  %v2250_v63 = vmul.f32 %v1800_v42, %v1186_v54  ;;  %v2252_v9 = vmul.f32 %v1802_v46, %v1186_v54  ;;  %v2258_v16 = vmul.f32 %v1804_v47, %v1186_v54 }
 0x2a1   :  { %v2260_v17 = vmul.f32 %v1806_v44, %v1186_v54 }
 0x2a2   :  { %v2242_v52 = vmul.f32 %v1818_v41, %v1185_v48  ;;  %v1196_v15 = vpack.c.bf16 %v2252_v9, %v2250_v63 }
 0x2a3   :  { %v1198_v53 = vpack.c.bf16 %v2260_v17, %v2258_v16 }
 0x2a4   :  { %v2245_v56 = vmul.f32 %v1808_v49, %v2242_v52  ;;  %v2248_v61 = vmul.f32 %v1810_v57, %v2242_v52 }
 0x2a6   :  { %v1197_v10 = vpack.c.bf16 %v2248_v61, %v2245_v56 }
 0x32a   :  { %v592_v23 = vpop.f32.mrb[28].mxu0 }
 0x32b   :  { %v598_v20 = vpack.c.bf16 %v592_v23, %v592_v23  ;;  %v594_v21 = vpop.f32.mrb[29].mxu0 }
 0x32c   :  { %v595_v22 = vpop.f32.mrb[30].mxu0 }
 0x32d   :  { %v596_v24 = vpop.f32.mrb[31].mxu0  ;;  %1673 = vmatmul.mubr.msk.bf16.vlgmr.msra.gmra.mrb[28].mxu1 %vm599_vm2, %v598_v20 }
 0x400   :  { %v637_v49 = vpop.f32.mrb[28].mxu1 }
 0x401   :  { %v644_v50 = vmul.f32 %v637_v49, %v637_v49  ;;  %v639_v57 = vpop.f32.mrb[29].mxu1 }
 0x402   :  { %v645_v42 = vmul.f32 %v639_v57, %v639_v57  ;;  %v641_v18 = vpop.f32.mrb[30].mxu1 }
 0x403   :  { %v642_v46 = vpop.f32.mrb[31].mxu1 }
 0x404   :  { %v646_v19 = vadd.f32 %v645_v42, %v644_v50 }
 0x406   :  { %647 = vadd.xlane.f32.xlu0 %v646_v19 }
 0x493   :  { %v648_v23 = vpop.xlane.xlu0 %647 }
 0x494   :  { %v649_v20 = vmax.f32 %v648_v23, 1e-24 }
 0x496   :  { %1819 = vrsqrt.f32 %v649_v20 }
 0x4a0   :  { %v1820_v21 = vpop.eup %1819 }
 0x4a1   :  { %v651_v22 = vmul.f32 %v1820_v21, %v637_v49  ;;  %v652_v47 = vmul.f32 %v1820_v21, %v639_v57 }
 0x4a3   :  { %v653_v24 = vrot.slane %v651_v22, 4  ;;  %v659_v44 = vrot.slane %v652_v47, 4 }
 0x4a5   :  { %v654_v26 = vmax.f32 %v651_v22, %v653_v24  ;;  %v660_v27 = vmax.f32 %v652_v47, %v659_v44 }
 0x4a7   :  { %v655_v30 = vrot.slane %v654_v26, 2  ;;  %v661_v59 = vrot.slane %v660_v27, 2 }
 0x4a9   :  { %v656_v60 = vmax.f32 %v654_v26, %v655_v30  ;;  %v662_v62 = vmax.f32 %v660_v27, %v661_v59 }
 0x4ab   :  { %v657_v1 = vrot.slane %v656_v60, 1  ;;  %v663_v3 = vrot.slane %v662_v62, 1 }
 0x4ad   :  { %v658_v4 = vmax.f32 %v656_v60, %v657_v1  ;;  %v664_v5 = vmax.f32 %v662_v62, %v663_v3 }
 0x4af   :  { %v665_v32 = vsub.f32 %v651_v22, %v658_v4  ;;  %v666_v34 = vsub.f32 %v652_v47, %v664_v5 }
 0x4b1   :  { %v667_v7 = vmul.f32 1.442695, %v665_v32  ;;  %v669_v31 = vmul.f32 1.442695, %v666_v34 }
 0x4b3   :  { %1821 = vpow2.f32 %v667_v7 }
 0x4b4   :  { %1823 = vpow2.f32 %v669_v31 }
 0x4bd   :  { %v1822_v8 = vpop.eup %1821 }
 0x4be   :  { %v1824_v39 = vpop.eup %1823  ;;  %v671_v40 = vrot.slane %v1822_v8, 4 }
 0x4bf   :  { %v677_v41 = vrot.slane %v1824_v39, 4 }
 0x4c0   :  { %v672_v43 = vadd.f32 %v1822_v8, %v671_v40 }
 0x4c1   :  { %v678_v45 = vadd.f32 %v1824_v39, %v677_v41 }
 0x4c2   :  { %v673_v48 = vrot.slane %v672_v43, 2 }
 0x4c3   :  { %v679_v51 = vrot.slane %v678_v45, 2 }
 0x4c4   :  { %v674_v54 = vadd.f32 %v673_v48, %v672_v43  ;;  %v358_v43 = vmax.f32 %v2219_v36, 0.0 }
 0x4c5   :  { %v680_v49 = vadd.f32 %v679_v51, %v678_v45  ;;  %v359_v45 = vmax.f32 %v2221_v55, 0.0 }
 0x4c6   :  { %v675_v50 = vrot.slane %v674_v54, 1 }
 0x4c7   :  { %v681_v57 = vrot.slane %v680_v49, 1  ;;  %v1050_v51 = vmax.f32 %v358_v43, %v359_v45 }
 0x4c8   :  { %v676_v42 = vadd.f32 %v675_v50, %v674_v54  ;;  %v1947_v54 = vmov 0.0  }
 0x4c9   :  { %v682_v18 = vadd.f32 %v681_v57, %v680_v49  ;;  %1704 = vmatprep.subr.bf16.mxu1 %v1947_v54  ;;  %1718 = vmatprep.subr.bf16.mxu0 %v1947_v54  ;;  %v94_v57 = vld [vmem:[#allocation2] sm:$0xff] }
 0x4ca   :  { %1825 = vrcp.f32 %v676_v42  ;;  %1706 = vmatprep.mubr.msk.bf16.mxu1 %vm1948_vm3, %v1947_v54 }
 0x4cb   :  { %1827 = vrcp.f32 %v682_v18 }
 0x4d4   :  { %v1826_v46 = vpop.eup %1825 }
 0x4d5   :  { %v1828_v19 = vpop.eup %1827  ;;  %v685_v23 = vmul.f32 %v1826_v46, %v676_v42  ;;  %v95_v42 = vld [vmem:[#allocation2 + $0x8] sm:$0xff] }
 0x4d6   :  { %v686_v20 = vmul.f32 %v1828_v19, %v682_v18  ;;  %v2281_v18 = vpack.c.bf16 %v95_v42, %v94_v57 }
 0x4d7   :  { %v687_v21 = vsub.f32 2.0, %v685_v23 }
 0x4d8   :  { %v688_v22 = vsub.f32 2.0, %v686_v20 }
 0x4d9   :  { %v689_v47 = vmul.f32 %v1826_v46, %v687_v21  ;;  %v96_v46 = vld [vmem:[#allocation2 + $0x10] sm:$0xff] }
 0x4da   :  { %v690_v24 = vmul.f32 %v1828_v19, %v688_v22  ;;  %v97_v19 = vld [vmem:[#allocation2 + $0x18] sm:$0xff] }
 0x4db   :  { %v691_v44 = vmul.f32 %v1822_v8, %v689_v47  ;;  %v350_v8 = vmax.f32 %v2211_v33, 0.0  ;;  %v2285_v23 = vpack.c.bf16 %v97_v19, %v96_v46 }
 0x4dc   :  { %v692_v26 = vmul.f32 %v1824_v39, %v690_v24  ;;  %v351_v39 = vmax.f32 %v2213_v35, 0.0 }
 0x4dd   :  { %v693_v27 = vpack.c.bf16 %v691_v44, %v691_v44 }
 0x4de   :  { %v694_v30 = vpack.c.bf16 %v692_v26, %v692_v26  ;;  %v695_v59 = vadd.f32 %v692_v26, %v691_v44  ;;  %v1044_v48 = vmax.f32 %v350_v8, %v351_v39 }
 0x4df   :  { %v964_v20 = vsel %vm129_vm0, %v693_v27, 0 }
 0x4e0   :  { %734 = vmatprep.mubr.bf16.mxu0 %v694_v30  ;;  %696 = vadd.xlane.f32.xlu1 %v695_v59 }
 0x4e1   :  { %735 = vmatmul.mubr.bf16.vlgmr.msra.gmra.mrb[32].mxu0 %v693_v27 }
 0x4e2   :  { %1720 = vmatprep.mubr.msk.bf16.mxu0 %vm1948_vm3, %v1947_v54 }
 0x56d   :  { %v697_v60 = vpop.xlane.xlu1 %696 }
 0x56e   :  { %1829 = vrcp.f32 %v697_v60 }
 0x578   :  { %v1830_v62 = vpop.eup %1829 }
 0x579   :  { %v699_v1 = vmul.f32 %v1830_v62, %v697_v60 }
 0x57b   :  { %v700_v3 = vsub.f32 2.0, %v699_v1  ;;  %v355_v1 = vmax.f32 %v2217_v13, 0.0 }
 0x57d   :  { %v701_v4 = vmul.f32 %v1830_v62, %v700_v3  ;;  %v354_v62 = vmax.f32 %v2215_v12, 0.0 }
 0x5b4   :  { %v736_v5 = vpop.f32.mrb[32].mxu0 }
 0x5b5   :  { %v742_v32 = vmul.f32 %v736_v5, %v701_v4  ;;  %v738_v34 = vpop.f32.mrb[33].mxu0  ;;  %v362_v5 = vmax.f32 %v2223_v37, 0.0 }
 0x5b6   :  { %v739_v7 = vpop.f32.mrb[34].mxu0  ;;  %v1047_v34 = vmax.f32 %v354_v62, %v355_v1 }
 0x5b7   :  { %v740_v31 = vpop.f32.mrb[35].mxu0  ;;  %v743_v40 = vmul.f32 %v742_v32, %v742_v32 }
 0x5b9   :  { %v744_v41 = vsel %vm599_vm2, %v743_v40, 0.0 }
 0x5ba   :  { %745 = vadd.xlane.f32.xlu0 %v744_v41 }
 0x5be   :  { %1045 = vmax.xlane.f32.xlu0 %v1044_v48 }
 0x5c2   :  { %1051 = vmax.xlane.f32.xlu0 %v1050_v51 }
 0x647   :  { %v746_v33 = vpop.xlane.xlu0 %745 }
 0x648   :  { %v747_v35 = vmax.f32 %v746_v33, 1e-24 }
 0x64a   :  { %1831 = vrsqrt.f32 %v747_v35 }
 0x64b   :  { %v1046_v21 = vpop.xlane.xlu0 %1045 }
 0x64c   :  { %v1056_v22 = vsub.f32 %v350_v8, %v1046_v21  ;;  %v1057_v47 = vsub.f32 %v351_v39, %v1046_v21 }
 0x64e   :  { %v1064_v44 = vmul.f32 1.442695, %v1056_v22  ;;  %v1066_v59 = vmul.f32 1.442695, %v1057_v47 }
 0x64f   :  { %v1052_v24 = vpop.xlane.xlu0 %1051 }
 0x650   :  { %v1060_v26 = vsub.f32 %v358_v43, %v1052_v24  ;;  %v1061_v60 = vsub.f32 %v359_v45, %v1052_v24  ;;  %1833 = vpow2.f32 %v1064_v44 }
 0x651   :  { %1835 = vpow2.f32 %v1066_v59 }
 0x652   :  { %v1074_v27 = vmul.f32 1.442695, %v1061_v60 }
 0x654   :  { %v1832_v36 = vpop.eup %1831 }
 0x655   :  { %v2275_v55 = vmul.f32 %v1832_v36, %v742_v32  ;;  %v363_v32 = vmax.f32 %v2225_v38, 0.0 }
 0x657   :  { %v750_v49 = vpack.c.bf16 %v2275_v55, %v2275_v55  ;;  %v1053_v31 = vmax.f32 %v362_v5, %v363_v32 }
 0x659   :  { %v752_v50 = vsel %vm599_vm2, %v750_v49, 0 }
 0x65a   :  { %1705 = vmatpush3.bf16.xpose.msra.mxu1 %v752_v50  ;;  %v2303_v7 = vpop.eup %1833 }
 0x65b   :  { %1710 = vmatprep.subr.bf16.mxu1 %v1947_v54  ;;  %v2305_v13 = vpop.eup %1835 }
 0x65c   :  { %v1080_v37 = vadd.f32 %v2305_v13, %v2303_v7 }
 0x661   :  { %1707 = vmatmul.mubr.msk.bf16.vlgmr.msra.gmra.mrb[32].mxu1 %vm599_vm2, %v750_v49 }
 0x662   :  { %1711 = vmatpush3.bf16.msra.mxu1 %v2281_v18  ;;  %1714 = vmatprep.mubr.msk.bf16.mxu1 %vm1948_vm3, %v1947_v54 }
 0x663   :  { %1712 = vmatprep.subr.bf16.mxu1 %v1947_v54 }
 0x666   :  { %1713 = vmatpush3.bf16.msra.mxu1 %v2285_v23 }
 0x667   :  { %1680 = vmatprep.subr.msk.bf16.mxu1 %vm129_vm0, %v694_v30  ;;  %v1072_v30 = vmul.f32 1.442695, %v1060_v26 }
 0x669   :  { %1715 = vmatmul.mubr.msk.bf16.vlgmr.msra.gmra.mrb[36].mxu1 %vm599_vm2, %v750_v49  ;;  %1837 = vpow2.f32 %v1072_v30 }
 0x66a   :  { %970 = vmatpush1.bf16.msra.mxu1 %v964_v20  ;;  %1001 = vmatprep.mubr.bf16.mxu1 %v1946_v0  ;;  %1839 = vpow2.f32 %v1074_v27 }
 0x66b   :  { %1244 = vmatprep.subr.bf16.mxu1 %v1197_v10 }
 0x673   :  { %v2308_v45 = vpop.eup %1837 }
 0x674   :  { %v2312_v38 = vpop.eup %1839 }
 0x675   :  { %v1086_v48 = vadd.f32 %v2312_v38, %v2308_v45 }
 0x734   :  { %v788_v3 = vpop.f32.mrb[32].mxu1 }
 0x735   :  { %v1708_v56 = vpop.f32.mrb[33].mxu1  ;;  %v795_v61 = vsel %vm794_vm4, %v788_v3, -inf }
 0x736   :  { %796 = vmax.xlane.f32.xlu1 %v795_v61  ;;  %v791_v10 = vpop.f32.mrb[34].mxu1 }
 0x737   :  { %v1709_v4 = vpop.f32.mrb[35].mxu1 }
 0x73a   :  { %1048 = vmax.xlane.f32.xlu1 %v1047_v34 }
 0x73c   :  { %v844_v12 = vpop.f32.mrb[36].mxu1 }
 0x73d   :  { %v850_v40 = vpack.c.bf16 %v844_v12, %v844_v12  ;;  %v1716_v8 = vpop.f32.mrb[37].mxu1 }
 0x73e   :  { %1054 = vmax.xlane.f32.xlu1 %v1053_v31  ;;  %v847_v39 = vpop.f32.mrb[38].mxu1 }
 0x73f   :  { %v855_v41 = vsel %vm129_vm0, %v850_v40, 0  ;;  %v1717_v43 = vpop.f32.mrb[39].mxu1 }
 0x740   :  { %1719 = vmatpush3.bf16.msra.mxu0 %v855_v41  ;;  %v347_v41 = vmax.f32 %v2209_v14, 0.0 }
 0x742   :  { %1081 = vadd.xlane.f32.xlu1 %v1080_v37 }
 0x746   :  { %1087 = vadd.xlane.f32.xlu1 %v1086_v48 }
 0x7c3   :  { %v797_v51 = vpop.xlane.xlu1 %796 }
 0x7c4   :  { %v798_v33 = vsub.f32 %v788_v3, %v797_v51 }
 0x7c6   :  { %v799_v35 = vmul.f32 1.442695, %v798_v33 }
 0x7c7   :  { %v1049_v36 = vpop.xlane.xlu1 %1048 }
 0x7c8   :  { %1841 = vpow2.f32 %v799_v35  ;;  %v1058_v49 = vsub.f32 %v354_v62, %v1049_v36  ;;  %v1059_v50 = vsub.f32 %v355_v1, %v1049_v36 }
 0x7ca   :  { %v1068_v57 = vmul.f32 1.442695, %v1058_v49  ;;  %v1070_v42 = vmul.f32 1.442695, %v1059_v50  ;;  %v1039_v49 = vpack.c.bf16 %v347_v41, %v347_v41 }
 0x7cb   :  { %v1055_v46 = vpop.xlane.xlu1 %1054 }
 0x7cc   :  { %1843 = vpow2.f32 %v1068_v57  ;;  %v1062_v19 = vsub.f32 %v362_v5, %v1055_v46  ;;  %v1063_v20 = vsub.f32 %v363_v32, %v1055_v46 }
 0x7cd   :  { %1845 = vpow2.f32 %v1070_v42 }
 0x7ce   :  { %v1076_v21 = vmul.f32 1.442695, %v1062_v19  ;;  %v1078_v22 = vmul.f32 1.442695, %v1063_v20 }
 0x7cf   :  { %v1082_v62 = vpop.xlane.xlu1 %1081 }
 0x7d0   :  { %1847 = vpow2.f32 %v1076_v21 }
 0x7d1   :  { %1849 = vpow2.f32 %v1078_v22 }
 0x7d2   :  { %v1842_v47 = vpop.eup %1841  ;;  %1851 = vrcp.f32 %v1082_v62 }
 0x7d3   :  { %v801_v24 = vsel %vm794_vm4, %v1842_v47, 0.0  ;;  %v1088_v1 = vpop.xlane.xlu1 %1087 }
 0x7d4   :  { %802 = vadd.xlane.f32.xlu0 %v801_v24 }
 0x7d6   :  { %v1844_v44 = vpop.eup %1843 }
 0x7d7   :  { %v1846_v26 = vpop.eup %1845 }
 0x7d8   :  { %v1083_v59 = vadd.f32 %v1846_v26, %v1844_v44 }
 0x7da   :  { %v1848_v60 = vpop.eup %1847  ;;  %1084 = vadd.xlane.f32.xlu0 %v1083_v59 }
 0x7db   :  { %v1850_v30 = vpop.eup %1849 }
 0x7dc   :  { %v1089_v27 = vadd.f32 %v1850_v30, %v1848_v60  ;;  %v1852_v61 = vpop.eup %1851 }
 0x7dd   :  { %v1096_v5 = vmul.f32 %v1852_v61, %v1082_v62 }
 0x7de   :  { %1090 = vadd.xlane.f32.xlu0 %v1089_v27 }
 0x7df   :  { %v1100_v31 = vsub.f32 2.0, %v1096_v5 }
 0x7e1   :  { %v1104_v48 = vmul.f32 %v1852_v61, %v1100_v31 }
 0x7e3   :  { %v1108_v42 = vmul.f32 %v2303_v7, %v1104_v48  ;;  %v1109_v14 = vmul.f32 %v2305_v13, %v1104_v48 }
 0x861   :  { %v803_v3 = vpop.xlane.xlu0 %802 }
 0x862   :  { %1853 = vrcp.f32 %v803_v3 }
 0x863   :  { %1855 = vrcp.f32 %v1088_v1 }
 0x867   :  { %v1085_v56 = vpop.xlane.xlu0 %1084 }
 0x868   :  { %1857 = vrcp.f32 %v1085_v56 }
 0x86b   :  { %v1091_v10 = vpop.xlane.xlu0 %1090 }
 0x86c   :  { %v1854_v4 = vpop.eup %1853  ;;  %1859 = vrcp.f32 %v1091_v10 }
 0x86d   :  { %v1856_v32 = vpop.eup %1855  ;;  %v805_v34 = vmul.f32 %v1854_v4, %v803_v3 }
 0x86e   :  { %v1098_v40 = vmul.f32 %v1856_v32, %v1088_v1 }
 0x86f   :  { %v806_v12 = vsub.f32 2.0, %v805_v34 }
 0x870   :  { %v1102_v51 = vsub.f32 2.0, %v1098_v40  ;;  %v106_v40 = vld [vmem:[%s2495_s6 + $0x18] sm:$0xff] }
 0x871   :  { %v807_v8 = vmul.f32 %v1854_v4, %v806_v12  ;;  %v103_v4 = vld [vmem:[%s2495_s6] sm:$0xff] }
 0x872   :  { %v1858_v39 = vpop.eup %1857  ;;  %v1106_v46 = vmul.f32 %v1856_v32, %v1102_v51  ;;  %v104_v32 = vld [vmem:[%s2495_s6 + $0x8] sm:$0xff]  ;;  %v1879_v51 = vld [vmem:[%s2489_s0] sm:$0xff] }
 0x873   :  { %v808_v43 = vmul.f32 %v1842_v47, %v807_v8  ;;  %v1097_v37 = vmul.f32 %v1858_v39, %v1085_v56  ;;  %v1193_v8 = vmul.f32 %v2236_v28, %v2242_v52 }
 0x874   :  { %v1113_v59 = vmul.f32 %v2312_v38, %v1106_v46  ;;  %v1112_v7 = vmul.f32 %v2308_v45, %v1106_v46  ;;  %v2332_v45 = vld [vmem:[%s2492_s3] ss:$0 sm:$0xff]  ;;  %v1882_v46 = vld [vmem:[%s2489_s0 + $0x28] sm:$0xff] }
 0x875   :  { %v809_v33 = vpack.c.bf16 %v808_v43, %v808_v43  ;;  %v1101_v35 = vsub.f32 2.0, %v1097_v37 }
 0x876   :  { %v1860_v36 = vpop.eup %1859 }
 0x877   :  { %v1105_v50 = vmul.f32 %v1858_v39, %v1101_v35  ;;  %v1099_v57 = vmul.f32 %v1860_v36, %v1091_v10  ;;  %1721 = vmatmul.mubr.msk.bf16.vlgmr.msra.gmra.mrb[36].mxu0 %vm794_vm4, %v809_v33  ;;  %v1195_v39 = vmul.f32 %v2239_v58, %v2242_v52 }
 0x878   :  { %1232 = vmatprep.mubr.bf16.mxu0 %v1039_v49 }
 0x879   :  { %v1110_v19 = vmul.f32 %v1844_v44, %v1105_v50  ;;  %v1103_v20 = vsub.f32 2.0, %v1099_v57  ;;  %v1111_v21 = vmul.f32 %v1846_v26, %v1105_v50  ;;  %v346_v44 = vmax.f32 %v2207_v11, 0.0  ;;  %v1881_v57 = vld [vmem:[%s2489_s0 + $0x20] sm:$0xff] }
 0x87a   :  { %v1199_v43 = vpack.c.bf16 %v1195_v39, %v1193_v8 }
 0x87b   :  { %v1107_v22 = vmul.f32 %v1860_v36, %v1103_v20  ;;  %v1117_v47 = vpack.c.bf16 %v1111_v21, %v1109_v14  ;;  %v1116_v24 = vpack.c.bf16 %v1110_v19, %v1108_v42  ;;  %v1038_v13 = vpack.c.bf16 %v346_v44, %v346_v44  ;;  %v1880_v36 = vld [vmem:[%s2489_s0 + $0x8] sm:$0xff] }
 0x87d   :  { %1200 = vmatprep.subr.bf16.mxu0 %v1117_v47  ;;  %v1115_v27 = vmul.f32 %v1850_v30, %v1107_v22  ;;  %v1114_v1 = vmul.f32 %v1848_v60, %v1107_v22  ;;  %v2344_v30 = vld [vmem:[%s2494_s5] ss:$0 sm:$0xff] }
 0x87e   :  { %1201 = vmatpush1.bf16.xpose.msra.mxu0 %v1116_v24 }
 0x87f   :  { %v1119_v62 = vpack.c.bf16 %v1115_v27, %v1113_v59  ;;  %v1118_v3 = vpack.c.bf16 %v1114_v1, %v1112_v7  ;;  %v1883_v27 = vld [vmem:[%s2489_s0 + $0x40] sm:$0xff]  ;;  %v1884_v7 = vld [vmem:[%s2489_s0 + $0x48] sm:$0xff] }
 0x881   :  { %1202 = vmatprep.subr.bf16.mxu0 %v1119_v62 }
 0x886   :  { %1203 = vmatpush1.bf16.xpose.msra.mxu0 %v1118_v3 }
 0x887   :  { %1343 = vmatprep.subr.bf16.mxu0 %v2229_v29  ;;  %v2337_v29 = vld [vmem:[%s2493_s4] ss:$0 sm:$0xff] }
 0x88d   :  { %1233 = vmatmul.mubr.bf16.vlgmr.msra.gmra.mrb[40].mxu0 %v1038_v13  ;;  %v1885_v13 = vld [vmem:[%s2489_s0 + $0x60] sm:$0xff] }
 0x88e   :  { %1344 = vmatpush1.bf16.xpose.msra.mxu0 %v2227_v25 }
 0x88f   :  { %1345 = vmatprep.subr.bf16.mxu0 %v2233_v2 }
 0x896   :  { %1346 = vmatpush1.bf16.xpose.msra.mxu0 %v2231_v6 }
 0x897   :  { %1738 = vmatprep.subr.bf16.mxu0 %v1947_v54 }
 0x94a   :  { %v891_v38 = vpop.f32.mrb[36].mxu0 }
 0x94b   :  { %v897_v26 = vmax.f32 %v891_v38, 0.0  ;;  %v1722_v11 = vpop.f32.mrb[37].mxu0 }
 0x94c   :  { %v894_v25 = vpop.f32.mrb[38].mxu0 }
 0x94d   :  { %v904_v2 = vmul.f32 %v2332_v45, %v897_v26  ;;  %v1723_v60 = vpop.f32.mrb[39].mxu0  ;;  %v1886_v26 = vld [vmem:[%s2489_s0 + $0x68] sm:$0xff] }
 0x94f   :  { %v911_v6 = vadd.f32 %v2337_v29, %v904_v2 }
 0x951   :  { %v912_v56 = vadd.f32 %v911_v6, %v2275_v55  ;;  %v105_v55 = vld [vmem:[%s2495_s6 + $0x10] sm:$0xff] }
 0x953   :  { %v919_v61 = vmul.f32 %v2344_v30, %v912_v56 }
 0x955   :  { %v920_v10 = vpack.c.bf16 %v919_v61, %v919_v61 }
 0x957   :  { %941 = vxpose.xlu1.c.b16.start.end [1/1] (short) (narrow) %v920_v10, 32 }
 0x95b   :  { %1753 = vset.pattern.permute.xlu1 %v1946_v0 }
 0x95f   :  { %923 = vperm.xlu1 %1753, %v103_v4  }
 0x960   :  { %v1234_v5 = vpop.f32.mrb[40].mxu0 }
 0x961   :  { %v1236_v34 = vpop.f32.mrb[41].mxu0  ;;  %v1240_v28 = vpack.c.bf16 %v1234_v5, %v1234_v5 }
 0x962   :  { %v1237_v12 = vpop.f32.mrb[42].mxu0 }
 0x963   :  { %v1238_v31 = vpop.f32.mrb[43].mxu0  ;;  %928 = vperm.xlu1 %1753, %v104_v32  }
 0x967   :  { %933 = vperm.xlu1 %1753, %v105_v55  }
 0x96b   :  { %938 = vperm.xlu1 %1753, %v106_v40  }
 0x9bd   :  { %v949_v41 = vpop.trf.xlu1 }
 0x9be   :  { %1681 = vmatmul.mubr.msk.bf16.vlgmr.msra.gmra.mrb[40].mxu1 %vm794_vm4, %v949_v41 }
 0x9bf   :  { %1245 = vmatpush1.bf16.msra.mxu1 %v1196_v15  ;;  %1011 = vmatprep.mubr.bf16.mxu1 %v1946_v0 }
 0x9c0   :  { %1246 = vmatprep.subr.bf16.mxu1 %v1199_v43 }
 0x9c1   :  { %v950_v37 = vpop.trf.xlu1 }
 0x9c3   :  { %1247 = vmatpush1.bf16.msra.mxu1 %v1198_v53 }
 0x9c4   :  { %1724 = vmatprep.subr.bf16.mxu1 %v1947_v54 }
 0x9c6   :  { %1682 = vmatmul.mubr.msk.bf16.gmra.mrb[44].mxu1 %vm794_vm4, %v950_v37 }
 0x9c7   :  { %1276 = vmatprep.mubr.bf16.mxu1 %v1946_v0 }
 0x9ce   :  { %1683 = vmatmul.mubr.msk.bf16.vlgmr.msra.gmra.mrb[48].mxu1 %vm599_vm2, %v1240_v28 }
 0x9cf   :  { %1726 = vmatprep.mubr.msk.bf16.mxu1 %vm1948_vm3, %v1947_v54 }
 0x9de   :  { %v2379_v58 = vpop.permute.xlu1 %923 }
 0x9e2   :  { %v2381_v52 = vpop.permute.xlu1 %928 }
 0x9e6   :  { %v2385_v53 = vpop.permute.xlu1 %933 }
 0x9ea   :  { %v2401_v14 = vpop.permute.xlu1 %938 }
 0xa91   :  { %v1003_v63 = vpop.f32.mrb[40].mxu1 }
 0xa92   :  { %v1005_v9 = vpop.f32.mrb[41].mxu1  ;;  %v1004_v15 = vadd.f32 %v1003_v63, %v2379_v58 }
 0xa93   :  { %v1007_v16 = vpop.f32.mrb[42].mxu1  ;;  %v1006_v17 = vadd.f32 %v1005_v9, %v2379_v58 }
 0xa94   :  { %v1009_v48 = vpop.f32.mrb[43].mxu1  ;;  %v1022_v33 = vadd.f32 %v1879_v51, %v1004_v15  ;;  %v1008_v35 = vadd.f32 %v1007_v16, %v2381_v52 }
 0xa95   :  { %v1023_v49 = vadd.f32 %v1880_v36, %v1006_v17  ;;  %v1010_v50 = vadd.f32 %v1009_v48, %v2381_v52 }
 0xa96   :  { %1030 = vst [vmem:[#allocation5] sm:$0xff] %v1022_v33  ;;  %v1024_v42 = vadd.f32 %v1881_v57, %v1008_v35 }
 0xa97   :  { %1031 = vst [vmem:[#allocation5 + $0x8] sm:$0xff] %v1023_v49  ;;  %v1025_v19 = vadd.f32 %v1882_v46, %v1010_v50 }
 0xa98   :  { %1032 = vst [vmem:[#allocation5 + $0x20] sm:$0xff] %v1024_v42 }
 0xa99   :  { %v1013_v20 = vpop.f32.mrb[44].mxu1  ;;  %1033 = vst [vmem:[#allocation5 + $0x28] sm:$0xff] %v1025_v19 }
 0xa9a   :  { %v1015_v21 = vpop.f32.mrb[45].mxu1  ;;  %v1014_v22 = vadd.f32 %v1013_v20, %v2385_v53 }
 0xa9b   :  { %v1017_v47 = vpop.f32.mrb[46].mxu1  ;;  %v1016_v24 = vadd.f32 %v1015_v21, %v2385_v53 }
 0xa9c   :  { %v1019_v59 = vpop.f32.mrb[47].mxu1  ;;  %v1026_v62 = vadd.f32 %v1883_v27, %v1014_v22  ;;  %v1018_v1 = vadd.f32 %v1017_v47, %v2401_v14 }
 0xa9d   :  { %v1027_v3 = vadd.f32 %v1884_v7, %v1016_v24  ;;  %v1020_v44 = vadd.f32 %v1019_v59, %v2401_v14 }
 0xa9e   :  { %1034 = vst [vmem:[#allocation5 + $0x40] sm:$0xff] %v1026_v62  ;;  %v1028_v38 = vadd.f32 %v1885_v13, %v1018_v1 }
 0xa9f   :  { %1035 = vst [vmem:[#allocation5 + $0x48] sm:$0xff] %v1027_v3  ;;  %v1029_v11 = vadd.f32 %v1886_v26, %v1020_v44 }
 0xaa0   :  { %1036 = vst [vmem:[#allocation5 + $0x60] sm:$0xff] %v1028_v38 }
 0xaa1   :  { %v1278_v25 = vpop.f32.mrb[48].mxu1  ;;  %1037 = vst [vmem:[#allocation5 + $0x68] sm:$0xff] %v1029_v11 }
 0xaa2   :  { %v1285_v2 = vmul.f32 %v1278_v25, %v1278_v25  ;;  %v1280_v60 = vpop.f32.mrb[49].mxu1 }
 0xaa3   :  { %v1286_v6 = vmul.f32 %v1280_v60, %v1280_v60  ;;  %v1282_v56 = vpop.f32.mrb[50].mxu1 }
 0xaa4   :  { %v1283_v61 = vpop.f32.mrb[51].mxu1 }
 0xaa5   :  { %v1287_v10 = vadd.f32 %v1286_v6, %v1285_v2 }
 0xaa7   :  { %1288 = vadd.xlane.f32.xlu0 %v1287_v10 }
 0xb34   :  { %v1289_v4 = vpop.xlane.xlu0 %1288 }
 0xb35   :  { %v1290_v5 = vmax.f32 %v1289_v4, 1e-24 }
 0xb37   :  { %1861 = vrsqrt.f32 %v1290_v5 }
 0xb41   :  { %v1862_v32 = vpop.eup %1861 }
 0xb42   :  { %v1292_v34 = vmul.f32 %v1862_v32, %v1278_v25  ;;  %v1293_v12 = vmul.f32 %v1862_v32, %v1280_v60 }
 0xb44   :  { %v1294_v31 = vrot.slane %v1292_v34, 4  ;;  %v1300_v55 = vrot.slane %v1293_v12, 4 }
 0xb46   :  { %v1295_v40 = vmax.f32 %v1292_v34, %v1294_v31  ;;  %v1301_v8 = vmax.f32 %v1293_v12, %v1300_v55 }
 0xb48   :  { %v1296_v39 = vrot.slane %v1295_v40, 2  ;;  %v1302_v41 = vrot.slane %v1301_v8, 2 }
 0xb4a   :  { %v1297_v43 = vmax.f32 %v1295_v40, %v1296_v39  ;;  %v1303_v37 = vmax.f32 %v1301_v8, %v1302_v41 }
 0xb4c   :  { %v1298_v28 = vrot.slane %v1297_v43, 1  ;;  %v1304_v63 = vrot.slane %v1303_v37, 1 }
 0xb4e   :  { %v1299_v9 = vmax.f32 %v1297_v43, %v1298_v28  ;;  %v1305_v15 = vmax.f32 %v1303_v37, %v1304_v63 }
 0xb50   :  { %v1306_v16 = vsub.f32 %v1292_v34, %v1299_v9  ;;  %v1307_v17 = vsub.f32 %v1293_v12, %v1305_v15 }
 0xb52   :  { %v1308_v48 = vmul.f32 1.442695, %v1306_v16  ;;  %v1310_v51 = vmul.f32 1.442695, %v1307_v17 }
 0xb54   :  { %1863 = vpow2.f32 %v1308_v48 }
 0xb55   :  { %1865 = vpow2.f32 %v1310_v51 }
 0xb5e   :  { %v1864_v33 = vpop.eup %1863 }
 0xb5f   :  { %v1866_v35 = vpop.eup %1865  ;;  %v1312_v36 = vrot.slane %v1864_v33, 4 }
 0xb60   :  { %v1318_v49 = vrot.slane %v1866_v35, 4 }
 0xb61   :  { %v1313_v50 = vadd.f32 %v1864_v33, %v1312_v36 }
 0xb62   :  { %v1319_v57 = vadd.f32 %v1866_v35, %v1318_v49 }
 0xb63   :  { %v1314_v42 = vrot.slane %v1313_v50, 2 }
 0xb64   :  { %v1320_v46 = vrot.slane %v1319_v57, 2 }
 0xb65   :  { %v1315_v19 = vadd.f32 %v1314_v42, %v1313_v50 }
 0xb66   :  { %v1321_v20 = vadd.f32 %v1320_v46, %v1319_v57 }
 0xb67   :  { %v1316_v21 = vrot.slane %v1315_v19, 1 }
 0xb68   :  { %v1322_v22 = vrot.slane %v1321_v20, 1 }
 0xb69   :  { %v1317_v47 = vadd.f32 %v1316_v21, %v1315_v19 }
 0xb6a   :  { %v1323_v24 = vadd.f32 %v1322_v22, %v1321_v20 }
 0xb6b   :  { %1867 = vrcp.f32 %v1317_v47 }
 0xb6c   :  { %1869 = vrcp.f32 %v1323_v24 }
 0xb75   :  { %v1868_v59 = vpop.eup %1867 }
 0xb76   :  { %v1870_v27 = vpop.eup %1869  ;;  %v1326_v62 = vmul.f32 %v1868_v59, %v1317_v47 }
 0xb77   :  { %v1327_v1 = vmul.f32 %v1870_v27, %v1323_v24 }
 0xb78   :  { %v1328_v7 = vsub.f32 2.0, %v1326_v62 }
 0xb79   :  { %v1329_v3 = vsub.f32 2.0, %v1327_v1 }
 0xb7a   :  { %v1330_v44 = vmul.f32 %v1868_v59, %v1328_v7 }
 0xb7b   :  { %v1331_v13 = vmul.f32 %v1870_v27, %v1329_v3 }
 0xb7c   :  { %v1332_v38 = vmul.f32 %v1864_v33, %v1330_v44 }
 0xb7d   :  { %v1333_v26 = vmul.f32 %v1866_v35, %v1331_v13 }
 0xb7e   :  { %v1334_v11 = vpack.c.bf16 %v1332_v38, %v1332_v38 }
 0xb7f   :  { %v1335_v25 = vpack.c.bf16 %v1333_v26, %v1333_v26  ;;  %v1336_v2 = vadd.f32 %v1333_v26, %v1332_v38 }
 0xb80   :  { %v1566_v28 = vsel %vm129_vm0, %v1334_v11, 0 }
 0xb81   :  { %1375 = vmatprep.mubr.bf16.mxu0 %v1335_v25  ;;  %1337 = vadd.xlane.f32.xlu0 %v1336_v2 }
 0xb82   :  { %1376 = vmatmul.mubr.bf16.vlgmr.msra.gmra.mrb[44].mxu0 %v1334_v11 }
 0xb83   :  { %1740 = vmatprep.mubr.msk.bf16.mxu0 %vm1948_vm3, %v1947_v54 }
 0xc0e   :  { %v1338_v60 = vpop.xlane.xlu0 %1337 }
 0xc0f   :  { %1871 = vrcp.f32 %v1338_v60 }
 0xc19   :  { %v1872_v6 = vpop.eup %1871 }
 0xc1a   :  { %v1340_v56 = vmul.f32 %v1872_v6, %v1338_v60 }
 0xc1c   :  { %v1341_v61 = vsub.f32 2.0, %v1340_v56 }
 0xc1e   :  { %v1342_v10 = vmul.f32 %v1872_v6, %v1341_v61 }
 0xc55   :  { %v1377_v4 = vpop.f32.mrb[44].mxu0 }
 0xc56   :  { %v1383_v5 = vmul.f32 %v1377_v4, %v1342_v10  ;;  %v1379_v32 = vpop.f32.mrb[45].mxu0 }
 0xc57   :  { %v1380_v34 = vpop.f32.mrb[46].mxu0  ;;  %v1890_v32 = vld [vmem:[%s2489_s0 + $0x38] sm:$0xff] }
 0xc58   :  { %v1381_v12 = vpop.f32.mrb[47].mxu0  ;;  %v1384_v31 = vmul.f32 %v1383_v5, %v1383_v5 }
 0xc5a   :  { %v1385_v55 = vsel %vm599_vm2, %v1384_v31, 0.0 }
 0xc5b   :  { %1386 = vadd.xlane.f32.xlu0 %v1385_v55 }
 0xce8   :  { %v1387_v40 = vpop.xlane.xlu0 %1386 }
 0xce9   :  { %v1388_v8 = vmax.f32 %v1387_v40, 1e-24 }
 0xceb   :  { %1873 = vrsqrt.f32 %v1388_v8  ;;  %v1891_v8 = vld [vmem:[%s2489_s0 + $0x50] sm:$0xff] }
 0xcf5   :  { %v1874_v39 = vpop.eup %1873 }
 0xcf6   :  { %v1390_v41 = vmul.f32 %v1874_v39, %v1383_v5 }
 0xcf8   :  { %v1391_v43 = vpack.c.bf16 %v1390_v41, %v1390_v41 }
 0xcfa   :  { %v1393_v37 = vsel %vm599_vm2, %v1391_v43, 0 }
 0xcfb   :  { %1725 = vmatpush3.bf16.xpose.msra.mxu1 %v1393_v37  ;;  %v1892_v37 = vld [vmem:[%s2489_s0 + $0x58] sm:$0xff] }
 0xcfc   :  { %1730 = vmatprep.subr.bf16.mxu1 %v1947_v54 }
 0xd02   :  { %1727 = vmatmul.mubr.msk.bf16.vlgmr.msra.gmra.mrb[52].mxu1 %vm599_vm2, %v1391_v43 }
 0xd03   :  { %1731 = vmatpush3.bf16.msra.mxu1 %v2281_v18  ;;  %1734 = vmatprep.mubr.msk.bf16.mxu1 %vm1948_vm3, %v1947_v54 }
 0xd04   :  { %1732 = vmatprep.subr.bf16.mxu1 %v1947_v54 }
 0xd07   :  { %1733 = vmatpush3.bf16.msra.mxu1 %v2285_v23 }
 0xd08   :  { %1687 = vmatprep.subr.msk.bf16.mxu1 %vm129_vm0, %v1335_v25 }
 0xd0a   :  { %1735 = vmatmul.mubr.msk.bf16.vlgmr.msra.gmra.mrb[56].mxu1 %vm599_vm2, %v1391_v43 }
 0xd0b   :  { %1572 = vmatpush1.bf16.msra.mxu1 %v1566_v28  ;;  %1603 = vmatprep.mubr.bf16.mxu1 %v1946_v0 }
 0xdd5   :  { %v1429_v63 = vpop.f32.mrb[52].mxu1 }
 0xdd6   :  { %v1728_v9 = vpop.f32.mrb[53].mxu1  ;;  %v1435_v18 = vsel %vm794_vm4, %v1429_v63, -inf }
 0xdd7   :  { %1436 = vmax.xlane.f32.xlu0 %v1435_v18  ;;  %v1432_v15 = vpop.f32.mrb[54].mxu1  ;;  %v1894_v18 = vld [vmem:[%s2489_s0 + $0x78] sm:$0xff] }
 0xdd8   :  { %v1729_v16 = vpop.f32.mrb[55].mxu1 }
 0xddd   :  { %v1484_v17 = vpop.f32.mrb[56].mxu1 }
 0xdde   :  { %v1490_v54 = vpack.c.bf16 %v1484_v17, %v1484_v17  ;;  %v1736_v48 = vpop.f32.mrb[57].mxu1 }
 0xddf   :  { %v1487_v23 = vpop.f32.mrb[58].mxu1 }
 0xde0   :  { %v1495_v51 = vsel %vm129_vm0, %v1490_v54, 0  ;;  %v1737_v33 = vpop.f32.mrb[59].mxu1 }
 0xde1   :  { %1739 = vmatpush3.bf16.msra.mxu0 %v1495_v51 }
 0xe64   :  { %v1437_v35 = vpop.xlane.xlu0 %1436 }
 0xe65   :  { %v1438_v36 = vsub.f32 %v1429_v63, %v1437_v35 }
 0xe67   :  { %v1439_v49 = vmul.f32 1.442695, %v1438_v36 }
 0xe69   :  { %1875 = vpow2.f32 %v1439_v49 }
 0xe73   :  { %v1876_v50 = vpop.eup %1875 }
 0xe74   :  { %v1441_v57 = vsel %vm794_vm4, %v1876_v50, 0.0 }
 0xe75   :  { %1442 = vadd.xlane.f32.xlu0 %v1441_v57 }
 0xf02   :  { %v1443_v42 = vpop.xlane.xlu0 %1442 }
 0xf03   :  { %1877 = vrcp.f32 %v1443_v42 }
 0xf0d   :  { %v1878_v46 = vpop.eup %1877 }
 0xf0e   :  { %v1445_v19 = vmul.f32 %v1878_v46, %v1443_v42 }
 0xf10   :  { %v1446_v20 = vsub.f32 2.0, %v1445_v19 }
 0xf12   :  { %v1447_v21 = vmul.f32 %v1878_v46, %v1446_v20 }
 0xf14   :  { %v1448_v22 = vmul.f32 %v1876_v50, %v1447_v21 }
 0xf16   :  { %v1449_v47 = vpack.c.bf16 %v1448_v22, %v1448_v22 }
 0xf18   :  { %1741 = vmatmul.mubr.msk.bf16.vlgmr.msra.gmra.mrb[48].mxu0 %vm794_vm4, %v1449_v47 }
 0xfeb   :  { %v1531_v24 = vpop.f32.mrb[48].mxu0 }
 0xfec   :  { %v1537_v59 = vmax.f32 %v1531_v24, 0.0  ;;  %v1742_v27 = vpop.f32.mrb[49].mxu0 }
 0xfed   :  { %v1534_v62 = vpop.f32.mrb[50].mxu0 }
 0xfee   :  { %v1538_v1 = vmul.f32 %v2332_v45, %v1537_v59  ;;  %v1743_v7 = vpop.f32.mrb[51].mxu0 }
 0xff0   :  { %v1539_v3 = vadd.f32 %v2337_v29, %v1538_v1 }
 0xff2   :  { %v1540_v44 = vadd.f32 %v1539_v3, %v1390_v41 }
 0xff4   :  { %v1541_v13 = vmul.f32 %v2344_v30, %v1540_v44  ;;  %v1887_v30 = vld [vmem:[%s2489_s0 + $0x10] sm:$0xff] }
 0xff6   :  { %v1542_v38 = vpack.c.bf16 %v1541_v13, %v1541_v13 }
 0xff8   :  { %1543 = vxpose.xlu0.c.b16.start.end [1/1] (short) (narrow) %v1542_v38, 32 }
0x1001   :  { %1754 = vset.pattern.permute.xlu0 %v1946_v0 }
0x105e   :  { %v1551_v26 = vpop.trf.xlu0 }
0x105f   :  { %1688 = vmatmul.mubr.msk.bf16.vlgmr.msra.gmra.mrb[60].mxu1 %vm794_vm4, %v1551_v26 }
0x1060   :  { %1613 = vmatprep.mubr.bf16.mxu1 %v1946_v0  ;;  %v1888_v0 = vld [vmem:[%s2489_s0 + $0x18] sm:$0xff] }
0x1062   :  { %v1552_v11 = vpop.trf.xlu0 }
0x1067   :  { %1689 = vmatmul.mubr.msk.bf16.gmra.mrb[64].mxu1 %vm794_vm4, %v1552_v11 }
0x1132   :  { %v1605_v25 = vpop.f32.mrb[60].mxu1 }
0x1133   :  { %v1606_v45 = vadd.f32 %v1605_v25, %v2379_v58  ;;  %v1607_v2 = vpop.f32.mrb[61].mxu1 }
0x1134   :  { %v1608_v29 = vadd.f32 %v1607_v2, %v2379_v58  ;;  %v1609_v60 = vpop.f32.mrb[62].mxu1  ;;  %v1889_v58 = vld [vmem:[%s2489_s0 + $0x30] sm:$0xff] }
0x1135   :  { %v1624_v6 = vadd.f32 %v1887_v30, %v1606_v45  ;;  %v1610_v56 = vadd.f32 %v1609_v60, %v2381_v52  ;;  %v1611_v61 = vpop.f32.mrb[63].mxu1 }
0x1136   :  { %v1625_v10 = vadd.f32 %v1888_v0, %v1608_v29  ;;  %v1612_v4 = vadd.f32 %v1611_v61, %v2381_v52 }
0x1137   :  { %1632 = vst [vmem:[#allocation5 + $0x10] sm:$0xff] %v1624_v6  ;;  %v1626_v5 = vadd.f32 %v1889_v58, %v1610_v56 }
0x1138   :  { %1633 = vst [vmem:[#allocation5 + $0x18] sm:$0xff] %v1625_v10  ;;  %v1627_v34 = vadd.f32 %v1890_v32, %v1612_v4 }
0x1139   :  { %1634 = vst [vmem:[#allocation5 + $0x30] sm:$0xff] %v1626_v5 }
0x113a   :  { %1635 = vst [vmem:[#allocation5 + $0x38] sm:$0xff] %v1627_v34  ;;  %v1615_v12 = vpop.f32.mrb[64].mxu1 }
0x113b   :  { %v1616_v31 = vadd.f32 %v1615_v12, %v2385_v53  ;;  %v1617_v55 = vpop.f32.mrb[65].mxu1 }
0x113c   :  { %v1618_v52 = vadd.f32 %v1617_v55, %v2385_v53  ;;  %v1619_v40 = vpop.f32.mrb[66].mxu1  ;;  %v1893_v53 = vld [vmem:[%s2489_s0 + $0x70] sm:$0xff] }
0x113d   :  { %v1628_v39 = vadd.f32 %v1891_v8, %v1616_v31  ;;  %v1620_v41 = vadd.f32 %v1619_v40, %v2401_v14  ;;  %v1621_v43 = vpop.f32.mrb[67].mxu1 }
0x113e   :  { %v1629_v28 = vadd.f32 %v1892_v37, %v1618_v52  ;;  %v1622_v63 = vadd.f32 %v1621_v43, %v2401_v14 }
0x113f   :  { %1636 = vst [vmem:[#allocation5 + $0x50] sm:$0xff] %v1628_v39  ;;  %v1630_v9 = vadd.f32 %v1893_v53, %v1620_v41 }
0x1140   :  { %1637 = vst [vmem:[#allocation5 + $0x58] sm:$0xff] %v1629_v28  ;;  %v1631_v15 = vadd.f32 %v1894_v18, %v1622_v63 }
0x1141   :  { %1638 = vst [vmem:[#allocation5 + $0x70] sm:$0xff] %v1630_v9 }
0x1142   :  { %1639 = vst [vmem:[#allocation5 + $0x78] sm:$0xff] %v1631_v15 }
0x1143   :  { %1928 = shalt.err (!%p1925_p12)
}
0x1144   :  { %s1929_s24 = scalar_lea.hbm %s2496_s7, 2048 }
0x1145   :  { %p1930_p13 = scmp.ne.s32.totalorder %s2496_s7, %s1929_s24  ;;  %p1933_p0 = scmp.lt.u32.totalorder %s1929_s24, %s2496_s7 }
0x1147   :  { %p1935_p1 = pnand %p1933_p0, %p1930_p13 }
0x1149   :  { %1938 = shalt.err (!%p1935_p1)
}
0x114a   :  { %s1950_s28 = smov 512   ;;  %s1951_s29 = smov 32  }
0x114b   :  { %1651 = dma.vmem_to_hbm [thread:$0]  %s1646_s17, 2048, %s2496_s7, [#allocation4], %s1950_s28, %s1950_s28, %s1951_s29  }
0x114c   :  { %1941 = dma.done.wait [#allocation4], 2048  }
0x114d   :  { %1942 = vsyncadd [#allocation4], 4294965248 }
0x114e   :  { %1655 = vsyncpa [#allocation3], 1 }
0x114f   :  { %1656 = vsyncpa [#allocation4], 1 }

</bundles_post_ra>
